<compile_context>
chip_gen: v7x
topology: tpu7x:2x2x1
jax: 0.10.0
libtpu: 0.0.40
codegen_flags: <defaults>
</compile_context>

<pallas_src>
import functools

import jax
import jax.numpy as jnp
from jax.experimental import pallas as pl
from jax.experimental.pallas import tpu as pltpu


def _round_up(x, m):
    return ((x + m - 1) // m) * m


# Conservative: fits the scoped-VMEM defaults on v5e/v6e (32/128 MiB) and
# v7x (32/64 MiB) with room for double-buffered DMA and temporaries.
_FAST_PATH_VMEM_BUDGET = 12 * 1024 * 1024


# ----------------------------------------------------------------------------
# Fast path: everything VMEM-resident, single invocation, exact two-pass stats
# ----------------------------------------------------------------------------
def _convblock_fused_kernel(patches_ref, w_ref, gamma_ref, beta_ref, out_ref,
                            *, m_real, m_pad, cout, eps):
    # patches: (M_pad, K_pad) bf16   w: (K_pad, C_pad) bf16
    # gamma/beta: (1, C_pad) f32     out: (M_pad, Cout) f32 (unpadded channels)
    y = jnp.dot(patches_ref[...], w_ref[...],
                preferred_element_type=jnp.float32)           # (M_pad, C_pad)

    inv_m = jnp.float32(1.0 / m_real)
    # Padded rows of `patches` are zero and the conv has no bias, so they add
    # nothing to the sum; divide by the *real* M.
    mean = jnp.sum(y, axis=0, keepdims=True) * inv_m          # (1, C_pad)
    d = y - mean
    # Each of the (M_pad - M) zero rows contributes mean^2 to the squared
    # deviation sum; subtract it in closed form (exact, no cancellation).
    m2 = (jnp.sum(d * d, axis=0, keepdims=True)
          - jnp.float32(m_pad - m_real) * mean * mean)
    var = jnp.maximum(m2 * inv_m, 0.0)

    scale = gamma_ref[...] * jax.lax.rsqrt(var + eps)         # EUP slot
    shift = beta_ref[...] - mean * scale
    out = jnp.maximum(y * scale + shift, 0.0)
    out_ref[...] = out[:, :cout].astype(out_ref.dtype)


# ----------------------------------------------------------------------------
# Tiled path, pass 1: per-channel batch stats via Chan/Welford parallel merge
# ----------------------------------------------------------------------------
def _convblock_stats_kernel(patches_ref, w_ref, gamma_ref, beta_ref,
                            scale_ref, shift_ref, mean_ref, m2_ref,
                            *, m_real, tile_m, eps):
    m_idx = pl.program_id(0)
    n_m = pl.num_programs(0)

    @pl.when(m_idx == 0)
    def _init():
        mean_ref[...] = jnp.zeros_like(mean_ref)
        m2_ref[...] = jnp.zeros_like(m2_ref)
        # Write the outputs too, so no block is ever left unwritten.
        scale_ref[...] = jnp.zeros_like(scale_ref)
        shift_ref[...] = jnp.zeros_like(shift_ref)

    y = jnp.dot(patches_ref[...], w_ref[...],
                preferred_element_type=jnp.float32)           # (tile_m, C_pad)

    # Valid-row counts are pure functions of the grid index (padding < tile_m,
    # so every tile has >= 1 valid row and no division can hit zero).
    c_a = m_idx.astype(jnp.float32) * jnp.float32(tile_m)      # rows merged so far
    c_b = jnp.minimum(jnp.float32(tile_m), jnp.float32(m_real) - c_a)

    # Tile mean / M2 over valid rows. Padded rows are exactly zero, so the sum
    # is unaffected and their mean_b^2 contribution to M2 is removed exactly.
    sum_b = jnp.sum(y, axis=0, keepdims=True)
    mean_b = sum_b / c_b
    d = y - mean_b
    m2_b = (jnp.sum(d * d, axis=0, keepdims=True)
            - (jnp.float32(tile_m) - c_b) * mean_b * mean_b)

    # Chan parallel merge (numerically stable; no E[y^2]-E[y]^2 cancellation).
    n_ab = c_a + c_b
    delta = mean_b - mean_ref[...]
    mean_ref[...] = mean_ref[...] + delta * (c_b / n_ab)
    m2_ref[...] = m2_ref[...] + m2_b + delta * delta * (c_a * c_b / n_ab)

    @pl.when(m_idx == n_m - 1)
    def _finalize():
        var = jnp.maximum(m2_ref[...] / jnp.float32(m_real), 0.0)   # biased var
        scale = gamma_ref[...] * jax.lax.rsqrt(var + eps)
        scale_ref[...] = scale
        shift_ref[...] = beta_ref[...] - mean_ref[...] * scale


# ----------------------------------------------------------------------------
# Tiled path, pass 2: recompute tile matmul, folded BN FMA + ReLU, narrow store
# ----------------------------------------------------------------------------
def _convblock_apply_kernel(scale_ref, shift_ref, patches_ref, w_ref, out_ref,
                            *, cout):
    y = jnp.dot(patches_ref[...], w_ref[...],
                preferred_element_type=jnp.float32)           # (tile_m, C_pad)
    out = jnp.maximum(y * scale_ref[...] + shift_ref[...], 0.0)
    out_ref[...] = out[:, :cout].astype(out_ref.dtype)


# ----------------------------------------------------------------------------
# Wrapper: NCHW API, single-build bf16 im2col, path selection, pallas_call
# ----------------------------------------------------------------------------
def conv_block_forward(x, weight, gamma, beta, *, stride=1, padding=None,
                       eps=1e-5, tile_m=1024, path="auto", out_layout="NCHW"):
    """ConvBlock forward (Conv2d bias=False -> BatchNorm2d batch stats -> ReLU).

    Args:
      x:      (N, Cin, H, W)  float32, NCHW like PyTorch.
      weight: (Cout, Cin, kh, kw) conv weight (no bias).
      gamma:  (Cout,) BatchNorm weight.   beta: (Cout,) BatchNorm bias.
      path:   "auto" | "fast" | "tiled".
      out_layout: "NCHW" (PyTorch parity, costs one transpose) or "NHWC".
    Returns:
      (N, Cout, Ho, Wo) or (N, Ho, Wo, Cout) float32.
    Note: conv operands go through the MXU in bf16 (f32 accumulation), so
    results match a bf16-operand reference, not a bit-exact f32 PyTorch run.
    """
    N, Cin, H, W = x.shape
    Cout, _, kh, kw = weight.shape
    if padding is None:
        padding = kh // 2
    Ho = (H + 2 * padding - kh) // stride + 1
    Wo = (W + 2 * padding - kw) // stride + 1

    M = N * Ho * Wo
    K = kh * kw * Cin

    LANE = 128
    K_pad = _round_up(K, 16)            # bf16 sublane packing for the RHS
    C_pad = _round_up(Cout, LANE)       # matmul / BN internal lane width
    tile_m = _round_up(min(tile_m, _round_up(M, 8)), 8)
    M_pad = _round_up(M, tile_m)
    n_m = M_pad // tile_m

    # ---- im2col, built ONCE: bf16 from the start, K-padding folded into the
    # same concatenate, row padding only when actually needed. --------------
    x_nhwc = jnp.transpose(x, (0, 2, 3, 1)).astype(jnp.bfloat16)
    x_sp = jnp.pad(
        x_nhwc, ((0, 0), (padding, padding), (padding, padding), (0, 0)))
    taps = []
    for i in range(kh):
        for j in range(kw):
            taps.append(x_sp[:, i:i + (Ho - 1) * stride + 1:stride,
                             j:j + (Wo - 1) * stride + 1:stride, :])
    if K_pad > K:
        taps.append(jnp.zeros((N, Ho, Wo, K_pad - K), jnp.bfloat16))
    patches = jnp.concatenate(taps, axis=-1).reshape(M, K_pad)
    if M_pad > M:
        patches = jnp.concatenate(
            [patches, jnp.zeros((M_pad - M, K_pad), jnp.bfloat16)], axis=0)

    # PyTorch weight (Cout, Cin, kh, kw) -> (kh, kw, Cin, Cout) -> (K, Cout)
    w_mat = jnp.transpose(weight, (2, 3, 1, 0)).reshape(K, Cout)
    w_p = jnp.zeros((K_pad, C_pad), jnp.bfloat16).at[:K, :Cout].set(
        w_mat.astype(jnp.bfloat16))
    gamma_p = jnp.zeros((1, C_pad), jnp.float32).at[0, :Cout].set(
        gamma.astype(jnp.float32))
    beta_p = jnp.zeros((1, C_pad), jnp.float32).at[0, :Cout].set(
        beta.astype(jnp.float32))

    out_shape = jax.ShapeDtypeStruct((M_pad, Cout), jnp.float32)
    cparams = dict(vmem_limit_bytes=32 * 1024 * 1024)

    resident_bytes = (M_pad * C_pad * 4      # f32 conv output held in VMEM
                      + M_pad * K_pad * 2    # bf16 patches
                      + K_pad * C_pad * 2    # bf16 weights
                      + M_pad * Cout * 4)    # f32 output
    if path == "auto":
        use_fast = resident_bytes <= _FAST_PATH_VMEM_BUDGET
    else:
        use_fast = (path == "fast")

    if use_fast:
        out_flat = pl.pallas_call(
            functools.partial(_convblock_fused_kernel, m_real=M, m_pad=M_pad,
                              cout=Cout, eps=eps),
            out_shape=out_shape,
            grid_spec=pltpu.PrefetchScalarGridSpec(
                num_scalar_prefetch=0,
                grid=(1,),
                in_specs=[
                    pl.BlockSpec((M_pad, K_pad), lambda i: (0, 0)),
                    pl.BlockSpec((K_pad, C_pad), lambda i: (0, 0)),
                    pl.BlockSpec((1, C_pad), lambda i: (0, 0)),
                    pl.BlockSpec((1, C_pad), lambda i: (0, 0)),
                ],
                out_specs=pl.BlockSpec((M_pad, Cout), lambda i: (0, 0)),
            ),
            compiler_params=pltpu.CompilerParams(
                dimension_semantics=("arbitrary",), **cparams),
        )(patches, w_p, gamma_p, beta_p)
    else:
        # Pass 1: batch statistics -> folded BN (scale, shift).
        scale, shift = pl.pallas_call(
            functools.partial(_convblock_stats_kernel, m_real=M,
                              tile_m=tile_m, eps=eps),
            out_shape=(jax.ShapeDtypeStruct((1, C_pad), jnp.float32),
                       jax.ShapeDtypeStruct((1, C_pad), jnp.float32)),
            grid_spec=pltpu.PrefetchScalarGridSpec(
                num_scalar_prefetch=0,
                grid=(n_m,),
                in_specs=[
                    pl.BlockSpec((tile_m, K_pad), lambda m: (m, 0)),
                    pl.BlockSpec((K_pad, C_pad), lambda m: (0, 0)),
                    pl.BlockSpec((1, C_pad), lambda m: (0, 0)),
                    pl.BlockSpec((1, C_pad), lambda m: (0, 0)),
                ],
                out_specs=[pl.BlockSpec((1, C_pad), lambda m: (0, 0)),
                           pl.BlockSpec((1, C_pad), lambda m: (0, 0))],
                scratch_shapes=[pltpu.VMEM((1, C_pad), jnp.float32),
                                pltpu.VMEM((1, C_pad), jnp.float32)],
            ),
            compiler_params=pltpu.CompilerParams(
                dimension_semantics=("arbitrary",), **cparams),
        )(patches, w_p, gamma_p, beta_p)

        # Pass 2: apply.  The M axis is independent -> "parallel", so both
        # TensorCores split it on v7x (no effect on 1-TC v5e/v6e).
        out_flat = pl.pallas_call(
            functools.partial(_convblock_apply_kernel, cout=Cout),
            out_shape=out_shape,
            grid_spec=pltpu.PrefetchScalarGridSpec(
                num_scalar_prefetch=0,
                grid=(n_m,),
                in_specs=[
                    pl.BlockSpec((1, C_pad), lambda m: (0, 0)),
                    pl.BlockSpec((1, C_pad), lambda m: (0, 0)),
                    pl.BlockSpec((tile_m, K_pad), lambda m: (m, 0)),
                    pl.BlockSpec((K_pad, C_pad), lambda m: (0, 0)),
                ],
                out_specs=pl.BlockSpec((tile_m, Cout), lambda m: (m, 0)),
            ),
            compiler_params=pltpu.CompilerParams(
                dimension_semantics=("parallel",), **cparams),
        )(scale, shift, patches, w_p)

    out = out_flat[:M].reshape(N, Ho, Wo, Cout)
    if out_layout == "NHWC":
        return out
    return jnp.transpose(out, (0, 3, 1, 2))   # PyTorch NCHW parity


# ----------------------------------------------------------------------------
# Pure-JAX reference (for correctness check)
# ----------------------------------------------------------------------------
def conv_block_reference(x, weight, gamma, beta, *, stride=1, padding=None,
                         eps=1e-5):
    Cout, _, kh, kw = weight.shape
    if padding is None:
        padding = kh // 2
    y = jax.lax.conv_general_dilated(
        x, weight, window_strides=(stride, stride),
        padding=[(padding, padding), (padding, padding)],
        dimension_numbers=("NCHW", "OIHW", "NCHW"),
    )
    mean = jnp.mean(y, axis=(0, 2, 3), keepdims=True)
    var = jnp.mean((y - mean) ** 2, axis=(0, 2, 3), keepdims=True)
    y_hat = (y - mean) * jax.lax.rsqrt(var + eps)
    out = y_hat * gamma.reshape(1, -1, 1, 1) + beta.reshape(1, -1, 1, 1)
    return jnp.maximum(out, 0.0)


if __name__ == "__main__":
    # Module config: ConvBlock(in_channel=4, out_channel=8, kernel_size=3)
    N, Cin, H, W = 2, 4, 16, 16
    Cout, ksize, stride = 8, 3, 1

    key = jax.random.PRNGKey(0)
    kx, kw_, kg, kb = jax.random.split(key, 4)
    x = jax.random.normal(kx, (N, Cin, H, W), dtype=jnp.float32)
    weight = jax.random.normal(kw_, (Cout, Cin, ksize, ksize),
                               dtype=jnp.float32) * 0.1
    gamma = 1.0 + 0.1 * jax.random.normal(kg, (Cout,), dtype=jnp.float32)
    beta = 0.1 * jax.random.normal(kb, (Cout,), dtype=jnp.float32)

    # Reference with operands rounded to bf16 (the kernel's MXU input
    # precision); accumulation, BN and ReLU are f32 in both.
    x_r = x.astype(jnp.bfloat16).astype(jnp.float32)
    w_r = weight.astype(jnp.bfloat16).astype(jnp.float32)
    ref = jax.block_until_ready(
        conv_block_reference(x_r, w_r, gamma, beta, stride=stride))

    # Fast (VMEM-resident, single pass) path — auto-selected at this size.
    out_fast = jax.block_until_ready(
        conv_block_forward(x, weight, gamma, beta, stride=stride))
    # Tiled two-pass path forced with small tiles to exercise the large-M code.
    out_tiled = jax.block_until_ready(
        conv_block_forward(x, weight, gamma, beta, stride=stride,
                           tile_m=128, path="tiled"))

    assert out_fast.shape == (N, Cout, H, W), out_fast.shape
    assert out_tiled.shape == (N, Cout, H, W), out_tiled.shape
    for out in (out_fast, out_tiled):
        max_err = float(jnp.max(jnp.abs(out - ref)))
        assert jnp.allclose(out, ref, atol=2e-3, rtol=2e-3), max_err
    print("KERNEL_OK")
</pallas_src>

<mosaic_0001>
module attributes {stable_mosaic.version = 11 : i64} {
  func.func @_convblock_fused_kernel(%arg0: i32, %arg1: memref<512x48xbf16, #tpu.memory_space<vmem>>, %arg2: memref<48x128xbf16, #tpu.memory_space<vmem>>, %arg3: memref<1x128xf32, #tpu.memory_space<vmem>>, %arg4: memref<1x128xf32, #tpu.memory_space<vmem>>, %arg5: memref<512x8xf32, #tpu.memory_space<vmem>>) attributes {dimension_semantics = [#tpu.dimension_semantics<arbitrary>], iteration_bounds = array<i64: 1>, scalar_prefetch = 0 : i64, scratch_operands = 0 : i64, tpu.core_type = #tpu.core_type<tc>, window_params = [{pipeline_mode = #tpu.pipeline_mode<synchronous>, transform_indices = @transform_0, window_bounds = array<i64: 512, 48>}, {pipeline_mode = #tpu.pipeline_mode<synchronous>, transform_indices = @transform_1, window_bounds = array<i64: 48, 128>}, {pipeline_mode = #tpu.pipeline_mode<synchronous>, transform_indices = @transform_2, window_bounds = array<i64: 1, 128>}, {pipeline_mode = #tpu.pipeline_mode<synchronous>, transform_indices = @transform_3, window_bounds = array<i64: 1, 128>}, {pipeline_mode = #tpu.pipeline_mode<synchronous>, transform_indices = @transform_4, window_bounds = array<i64: 512, 8>}]} {
    %c0 = arith.constant 0 : index
    %c0_0 = arith.constant 0 : index
    %0 = vector.load %arg1[%c0, %c0_0] : memref<512x48xbf16, #tpu.memory_space<vmem>>, vector<512x48xbf16>
    %c0_1 = arith.constant 0 : index
    %c0_2 = arith.constant 0 : index
    %1 = vector.load %arg2[%c0_1, %c0_2] : memref<48x128xbf16, #tpu.memory_space<vmem>>, vector<48x128xbf16>
    %cst = arith.constant dense<0.000000e+00> : vector<512x128xf32>
    %2 = tpu.matmul %0, %1, %cst {dimension_numbers = #tpu.dot_dimension_numbers<[1], [0], [0], [1], [0, 0, 1, 1], [], []>} : vector<512x48xbf16>, vector<48x128xbf16>, vector<512x128xf32> -> vector<512x128xf32>
    %cst_3 = arith.constant dense<0.000000e+00> : vector<128xf32>
    %3 = vector.multi_reduction <add>, %2, %cst_3 [0] : vector<512x128xf32> to vector<128xf32>
    %4 = vector.shape_cast %3 : vector<128xf32> to vector<1x128xf32>
    %cst_4 = arith.constant 0.001953125 : f32
    %5 = vector.broadcast %cst_4 : f32 to vector<1x128xf32>
    %6 = arith.mulf %4, %5 : vector<1x128xf32>
    %7 = vector.broadcast %6 : vector<1x128xf32> to vector<512x128xf32>
    %8 = arith.subf %2, %7 : vector<512x128xf32>
    %9 = arith.mulf %8, %8 : vector<512x128xf32>
    %cst_5 = arith.constant dense<0.000000e+00> : vector<128xf32>
    %10 = vector.multi_reduction <add>, %9, %cst_5 [0] : vector<512x128xf32> to vector<128xf32>
    %11 = vector.shape_cast %10 : vector<128xf32> to vector<1x128xf32>
    %cst_6 = arith.constant 0.000000e+00 : f32
    %12 = vector.broadcast %cst_6 : f32 to vector<1x128xf32>
    %13 = arith.mulf %12, %6 : vector<1x128xf32>
    %14 = arith.mulf %13, %6 : vector<1x128xf32>
    %15 = arith.subf %11, %14 : vector<1x128xf32>
    %cst_7 = arith.constant 0.001953125 : f32
    %16 = vector.broadcast %cst_7 : f32 to vector<1x128xf32>
    %17 = arith.mulf %15, %16 : vector<1x128xf32>
    %cst_8 = arith.constant 0.000000e+00 : f32
    %18 = vector.broadcast %cst_8 : f32 to vector<1x128xf32>
    %19 = arith.maximumf %17, %18 : vector<1x128xf32>
    %c0_9 = arith.constant 0 : index
    %c0_10 = arith.constant 0 : index
    %20 = vector.load %arg3[%c0_9, %c0_10] : memref<1x128xf32, #tpu.memory_space<vmem>>, vector<1x128xf32>
    %cst_11 = arith.constant 9.99999974E-6 : f32
    %21 = vector.broadcast %cst_11 : f32 to vector<1x128xf32>
    %22 = arith.addf %19, %21 : vector<1x128xf32>
    %23 = math.rsqrt %22 : vector<1x128xf32>
    %24 = arith.mulf %20, %23 : vector<1x128xf32>
    %c0_12 = arith.constant 0 : index
    %c0_13 = arith.constant 0 : index
    %25 = vector.load %arg4[%c0_12, %c0_13] : memref<1x128xf32, #tpu.memory_space<vmem>>, vector<1x128xf32>
    %26 = arith.mulf %6, %24 : vector<1x128xf32>
    %27 = arith.subf %25, %26 : vector<1x128xf32>
    %28 = vector.broadcast %24 : vector<1x128xf32> to vector<512x128xf32>
    %29 = arith.mulf %2, %28 : vector<512x128xf32>
    %30 = vector.broadcast %27 : vector<1x128xf32> to vector<512x128xf32>
    %31 = arith.addf %29, %30 : vector<512x128xf32>
    %cst_14 = arith.constant 0.000000e+00 : f32
    %32 = vector.broadcast %cst_14 : f32 to vector<512x128xf32>
    %33 = arith.maximumf %31, %32 : vector<512x128xf32>
    %34 = vector.extract_strided_slice %33 {offsets = [0, 0], sizes = [512, 8], strides = [1, 1]} : vector<512x128xf32> to vector<512x8xf32>
    %c0_15 = arith.constant 0 : index
    %c0_16 = arith.constant 0 : index
    %35 = vector.load %arg5[%c0_15, %c0_16] : memref<512x8xf32, #tpu.memory_space<vmem>>, vector<512x8xf32>
    tpu.vector_store %arg5[%c0_15, %c0_16], %34 {strides = array<i32>} : memref<512x8xf32, #tpu.memory_space<vmem>>, vector<512x8xf32>,
    return
  }
  func.func @transform_0(%arg0: i32) -> (i32, i32) {
    %c0_i32 = arith.constant 0 : i32
    %c0_i32_0 = arith.constant 0 : i32
    %c0_i32_1 = arith.constant 0 : i32
    return %c0_i32, %c0_i32_0 : i32, i32
  }
  func.func @transform_1(%arg0: i32) -> (i32, i32) {
    %c0_i32 = arith.constant 0 : i32
    %c0_i32_0 = arith.constant 0 : i32
    %c0_i32_1 = arith.constant 0 : i32
    return %c0_i32, %c0_i32_0 : i32, i32
  }
  func.func @transform_2(%arg0: i32) -> (i32, i32) {
    %c0_i32 = arith.constant 0 : i32
    %c0_i32_0 = arith.constant 0 : i32
    %c0_i32_1 = arith.constant 0 : i32
    return %c0_i32, %c0_i32_0 : i32, i32
  }
  func.func @transform_3(%arg0: i32) -> (i32, i32) {
    %c0_i32 = arith.constant 0 : i32
    %c0_i32_0 = arith.constant 0 : i32
    %c0_i32_1 = arith.constant 0 : i32
    return %c0_i32, %c0_i32_0 : i32, i32
  }
  func.func @transform_4(%arg0: i32) -> (i32, i32) {
    %c0_i32 = arith.constant 0 : i32
    %c0_i32_0 = arith.constant 0 : i32
    %c0_i32_1 = arith.constant 0 : i32
    return %c0_i32, %c0_i32_0 : i32, i32
  }
}

</mosaic_0001>

<bundles_post_ra>
// kernel: tpu_custom_call.1
= control target key start
LH: loop header
LB: loop body
LE: loop exit
PB: predicated region body
PF: predicated region fallthrough
CT: control target
= control target key end

     0   :  { %vm266_vm0 = vcmask 392192   ;;  %vm1135_vm1 = vcmask 64512   ;;  %s2764_s1 = inlined_call_operand.vmem [shape: bf16[48,128], index: 1, kind: input, shape index: {}]   ;;  %s2765_s0 = inlined_call_operand.vmem [shape: bf16[512,48], index: 0, kind: input, shape index: {}]   ;;  %s2766_s2 = inlined_call_operand.vmem [shape: f32[1,128], index: 2, kind: input, shape index: {}]   ;;  %s2767_s3 = inlined_call_operand.vmem [shape: f32[1,128], index: 3, kind: input, shape index: {}]   ;;  %s2768_s4 = inlined_call_operand.vmem [shape: f32[512,8], index: 4, kind: output, shape index: {}]  }
   0x1   :  { %v1382_v0 = vld [vmem:[%s2764_s1] sm:$0xff]   ;;  %v1383_v1 = vld [vmem:[%s2764_s1 + $0x8] sm:$0xff]   ;;  %v1384_v3 = vld [vmem:[%s2764_s1 + $0x10] sm:$0xff]  }
   0x2   :  { %1306 = vmatprep.subr.bf16.mxu0 %v1382_v0  ;;  %1376 = vmatprep.subr.bf16.mxu1 %v1382_v0  ;;  %v1385_v2 = vld [vmem:[%s2765_s0] sm:$0xff]   ;;  %v1386_v4 = vld [vmem:[%s2765_s0 + $0x8] sm:$0xff]   ;;  %v1387_v5 = vld [vmem:[%s2765_s0 + $0x10] sm:$0xff]  }
   0x3   :  { %1307 = vmatpush3.bf16.msra.mxu0 %v1382_v0  ;;  %1379 = vmatpush3.bf16.msra.mxu1 %v1382_v0  ;;  %v1388_v6 = vld [vmem:[%s2765_s0 + $0x18] sm:$0xff]   ;;  %v1389_v7 = vld [vmem:[%s2765_s0 + $0x20] sm:$0xff]   ;;  %v1402_v9 = vld [vmem:[%s2765_s0 + $0x88] sm:$0xff]  }
   0x4   :  { %1308 = vmatprep.subr.bf16.mxu0 %v1383_v1  ;;  %1377 = vmatprep.subr.bf16.mxu1 %v1383_v1  ;;  %v1401_v8 = vld [vmem:[%s2765_s0 + $0x80] sm:$0xff]   ;;  %v1403_v10 = vld [vmem:[%s2765_s0 + $0x90] sm:$0xff]   ;;  %v1390_v11 = vld [vmem:[%s2765_s0 + $0x28] sm:$0xff]  }
   0x5   :  { %1312 = vmatprep.mubr.msk.bf16.mxu0 %vm266_vm0, %v1385_v2  ;;  %1344 = vmatprep.mubr.msk.bf16.mxu1 %vm266_vm0, %v1401_v8  ;;  %v1391_v12 = vld [vmem:[%s2765_s0 + $0x30] sm:$0xff]   ;;  %v1404_v13 = vld [vmem:[%s2765_s0 + $0x98] sm:$0xff]   ;;  %v1405_v14 = vld [vmem:[%s2765_s0 + $0xa0] sm:$0xff]  }
   0x6   :  { %v1392_v15 = vld [vmem:[%s2765_s0 + $0x38] sm:$0xff]   ;;  %v1406_v16 = vld [vmem:[%s2765_s0 + $0xa8] sm:$0xff]   ;;  %v1393_v17 = vld [vmem:[%s2765_s0 + $0x40] sm:$0xff]  }
   0x7   :  { %1309 = vmatpush3.bf16.msra.mxu0 %v1383_v1  ;;  %1380 = vmatpush3.bf16.msra.mxu1 %v1383_v1  ;;  %v1407_v18 = vld [vmem:[%s2765_s0 + $0xb0] sm:$0xff]   ;;  %v1394_v19 = vld [vmem:[%s2765_s0 + $0x48] sm:$0xff]   ;;  %v1408_v20 = vld [vmem:[%s2765_s0 + $0xb8] sm:$0xff]  }
   0x8   :  { %1310 = vmatprep.subr.bf16.mxu0 %v1384_v3  ;;  %1378 = vmatprep.subr.bf16.mxu1 %v1384_v3  ;;  %v1395_v21 = vld [vmem:[%s2765_s0 + $0x50] sm:$0xff]   ;;  %v1409_v22 = vld [vmem:[%s2765_s0 + $0xc0] sm:$0xff]   ;;  %v1396_v23 = vld [vmem:[%s2765_s0 + $0x58] sm:$0xff]  }
   0x9   :  { %v1410_v24 = vld [vmem:[%s2765_s0 + $0xc8] sm:$0xff]   ;;  %v1397_v25 = vld [vmem:[%s2765_s0 + $0x60] sm:$0xff]   ;;  %v1411_v26 = vld [vmem:[%s2765_s0 + $0xd0] sm:$0xff]  }
   0xa   :  { %v1398_v27 = vld [vmem:[%s2765_s0 + $0x68] sm:$0xff]   ;;  %v1412_v28 = vld [vmem:[%s2765_s0 + $0xd8] sm:$0xff]   ;;  %v1399_v29 = vld [vmem:[%s2765_s0 + $0x70] sm:$0xff]  }
   0xb   :  { %1311 = vmatpush3.bf16.msra.mxu0 %v1384_v3  ;;  %1381 = vmatpush3.bf16.msra.mxu1 %v1384_v3  ;;  %v1413_v30 = vld [vmem:[%s2765_s0 + $0xe0] sm:$0xff]   ;;  %v1400_v31 = vld [vmem:[%s2765_s0 + $0x78] sm:$0xff]   ;;  %v1414_v32 = vld [vmem:[%s2765_s0 + $0xe8] sm:$0xff]  }
   0xc   :  { %v1415_v33 = vld [vmem:[%s2765_s0 + $0xf0] sm:$0xff]   ;;  %v1416_v34 = vld [vmem:[%s2765_s0 + $0xf8] sm:$0xff]  }
   0xe   :  { %1313 = vmatmul.mubr.msk.bf16.vlgmr.msra.gmra.mrb[0].mxu0 %vm266_vm0, %v1386_v4  ;;  %1345 = vmatmul.mubr.msk.bf16.vlgmr.msra.gmra.mrb[0].mxu1 %vm266_vm0, %v1402_v9 }
   0xf   :  { %1316 = vmatprep.mubr.msk.bf16.mxu0 %vm266_vm0, %v1387_v5  ;;  %1348 = vmatprep.mubr.msk.bf16.mxu1 %vm266_vm0, %v1403_v10 }
  0x16   :  { %1317 = vmatmul.mubr.msk.bf16.gmra.mrb[4].mxu0 %vm266_vm0, %v1388_v6  ;;  %1349 = vmatmul.mubr.msk.bf16.gmra.mrb[4].mxu1 %vm266_vm0, %v1404_v13 }
  0x17   :  { %1320 = vmatprep.mubr.msk.bf16.mxu0 %vm266_vm0, %v1389_v7  ;;  %1352 = vmatprep.mubr.msk.bf16.mxu1 %vm266_vm0, %v1405_v14 }
  0x1e   :  { %1321 = vmatmul.mubr.msk.bf16.gmra.mrb[8].mxu0 %vm266_vm0, %v1390_v11  ;;  %1353 = vmatmul.mubr.msk.bf16.gmra.mrb[8].mxu1 %vm266_vm0, %v1406_v16 }
  0x1f   :  { %1324 = vmatprep.mubr.msk.bf16.mxu0 %vm266_vm0, %v1391_v12  ;;  %1356 = vmatprep.mubr.msk.bf16.mxu1 %vm266_vm0, %v1407_v18 }
  0x26   :  { %1325 = vmatmul.mubr.msk.bf16.gmra.mrb[12].mxu0 %vm266_vm0, %v1392_v15  ;;  %1357 = vmatmul.mubr.msk.bf16.gmra.mrb[12].mxu1 %vm266_vm0, %v1408_v20 }
  0x27   :  { %1328 = vmatprep.mubr.msk.bf16.mxu0 %vm266_vm0, %v1393_v17  ;;  %1360 = vmatprep.mubr.msk.bf16.mxu1 %vm266_vm0, %v1409_v22 }
  0x2e   :  { %1329 = vmatmul.mubr.msk.bf16.gmra.mrb[16].mxu0 %vm266_vm0, %v1394_v19  ;;  %1361 = vmatmul.mubr.msk.bf16.gmra.mrb[16].mxu1 %vm266_vm0, %v1410_v24 }
  0x2f   :  { %1332 = vmatprep.mubr.msk.bf16.mxu0 %vm266_vm0, %v1395_v21  ;;  %1364 = vmatprep.mubr.msk.bf16.mxu1 %vm266_vm0, %v1411_v26 }
  0x36   :  { %1333 = vmatmul.mubr.msk.bf16.gmra.mrb[20].mxu0 %vm266_vm0, %v1396_v23  ;;  %1365 = vmatmul.mubr.msk.bf16.gmra.mrb[20].mxu1 %vm266_vm0, %v1412_v28 }
  0x37   :  { %1336 = vmatprep.mubr.msk.bf16.mxu0 %vm266_vm0, %v1397_v25  ;;  %1368 = vmatprep.mubr.msk.bf16.mxu1 %vm266_vm0, %v1413_v30 }
  0x3e   :  { %1337 = vmatmul.mubr.msk.bf16.gmra.mrb[24].mxu0 %vm266_vm0, %v1398_v27  ;;  %1369 = vmatmul.mubr.msk.bf16.gmra.mrb[24].mxu1 %vm266_vm0, %v1414_v32 }
  0x3f   :  { %1340 = vmatprep.mubr.msk.bf16.mxu0 %vm266_vm0, %v1399_v29  ;;  %1372 = vmatprep.mubr.msk.bf16.mxu1 %vm266_vm0, %v1415_v33 }
  0x46   :  { %1341 = vmatmul.mubr.msk.bf16.gmra.mrb[28].mxu0 %vm266_vm0, %v1400_v31  ;;  %1373 = vmatmul.mubr.msk.bf16.gmra.mrb[28].mxu1 %vm266_vm0, %v1416_v34 }
  0xe1   :  { %v1581_v35 = vpop.f32.mrb[0].mxu0  ;;  %v1595_v43 = vpop.f32.mrb[0].mxu1 }
  0xe2   :  { %2817 = vst [vmem:[#allocation2_spill] sm:$0xff] %v1581_v35  ;;  %v1583_v36 = vpop.f32.mrb[1].mxu0  ;;  %v1599_v45 = vpop.f32.mrb[1].mxu1 }
  0xe3   :  { %v1585_v37 = vpop.f32.mrb[2].mxu0  ;;  %2820 = vst [vmem:[#allocation5_spill] sm:$0xff] %v1599_v45  ;;  %v1604_v48 = vpop.f32.mrb[2].mxu1 }
  0xe4   :  { %2818 = vst [vmem:[#allocation3_spill] sm:$0xff] %v1585_v37  ;;  %v1587_v38 = vpop.f32.mrb[3].mxu0  ;;  %v1608_v50 = vpop.f32.mrb[3].mxu1 }
  0xe5   :  { %v652_v39 = vadd.f32 %v1587_v38, %v1583_v36 }
  0xe7   :  { %v653_v40 = vadd.f32 %v1581_v35, %v652_v39 }
  0xe9   :  { %v1592_v41 = vpop.f32.mrb[4].mxu0  ;;  %v654_v42 = vadd.f32 %v1585_v37, %v653_v40  ;;  %v1615_v55 = vpop.f32.mrb[4].mxu1 }
  0xea   :  { %v1597_v44 = vpop.f32.mrb[5].mxu0  ;;  %v1619_v57 = vpop.f32.mrb[5].mxu1 }
  0xeb   :  { %2819 = vst [vmem:[#allocation4_spill] sm:$0xff] %v1597_v44  ;;  %v655_v46 = vadd.f32 %v654_v42, %v1597_v44  ;;  %v1602_v47 = vpop.f32.mrb[6].mxu0  ;;  %v1624_v60 = vpop.f32.mrb[6].mxu1 }
  0xec   :  { %v1606_v49 = vpop.f32.mrb[7].mxu0  ;;  %v1628_v62 = vpop.f32.mrb[7].mxu1 }
  0xed   :  { %v656_v51 = vadd.f32 %v655_v46, %v1606_v49 }
  0xef   :  { %v657_v52 = vadd.f32 %v1592_v41, %v656_v51 }
  0xf1   :  { %v1612_v53 = vpop.f32.mrb[8].mxu0  ;;  %v658_v54 = vadd.f32 %v1602_v47, %v657_v52  ;;  %v1635_v3 = vpop.f32.mrb[8].mxu1 }
  0xf2   :  { %v1617_v56 = vpop.f32.mrb[9].mxu0  ;;  %v1639_v5 = vpop.f32.mrb[9].mxu1 }
  0xf3   :  { %v659_v58 = vadd.f32 %v658_v54, %v1617_v56  ;;  %v1622_v59 = vpop.f32.mrb[10].mxu0  ;;  %v1644_v8 = vpop.f32.mrb[10].mxu1 }
  0xf4   :  { %v1626_v61 = vpop.f32.mrb[11].mxu0  ;;  %v1648_v10 = vpop.f32.mrb[11].mxu1 }
  0xf5   :  { %v660_v63 = vadd.f32 %v659_v58, %v1626_v61 }
  0xf7   :  { %v661_v0 = vadd.f32 %v1612_v53, %v660_v63 }
  0xf9   :  { %v1632_v1 = vpop.f32.mrb[12].mxu0  ;;  %v662_v2 = vadd.f32 %v1622_v59, %v661_v0  ;;  %v1655_v15 = vpop.f32.mrb[12].mxu1 }
  0xfa   :  { %v1637_v4 = vpop.f32.mrb[13].mxu0  ;;  %v1659_v17 = vpop.f32.mrb[13].mxu1 }
  0xfb   :  { %v663_v6 = vadd.f32 %v662_v2, %v1637_v4  ;;  %v1642_v7 = vpop.f32.mrb[14].mxu0  ;;  %v1664_v20 = vpop.f32.mrb[14].mxu1 }
  0xfc   :  { %v1646_v9 = vpop.f32.mrb[15].mxu0  ;;  %v1668_v22 = vpop.f32.mrb[15].mxu1 }
  0xfd   :  { %v664_v11 = vadd.f32 %v663_v6, %v1646_v9 }
  0xff   :  { %v665_v12 = vadd.f32 %v1632_v1, %v664_v11 }
 0x101   :  { %v1652_v13 = vpop.f32.mrb[16].mxu0  ;;  %v666_v14 = vadd.f32 %v1642_v7, %v665_v12  ;;  %v1675_v27 = vpop.f32.mrb[16].mxu1 }
 0x102   :  { %2821 = vst [vmem:[#allocation6_spill] sm:$0xff] %v1652_v13  ;;  %v1657_v16 = vpop.f32.mrb[17].mxu0  ;;  %2824 = vst [vmem:[#allocation9_spill] sm:$0xff] %v1675_v27  ;;  %v1679_v29 = vpop.f32.mrb[17].mxu1 }
 0x103   :  { %v667_v18 = vadd.f32 %v666_v14, %v1657_v16  ;;  %v1662_v19 = vpop.f32.mrb[18].mxu0  ;;  %v1684_v32 = vpop.f32.mrb[18].mxu1 }
 0x104   :  { %2822 = vst [vmem:[#allocation7_spill] sm:$0xff] %v1662_v19  ;;  %v1666_v21 = vpop.f32.mrb[19].mxu0  ;;  %2827 = vst [vmem:[#allocation12_spill] sm:$0xff] %v1684_v32  ;;  %v1688_v34 = vpop.f32.mrb[19].mxu1 }
 0x105   :  { %v668_v23 = vadd.f32 %v667_v18, %v1666_v21  ;;  %2829 = vst [vmem:[#allocation14_spill] sm:$0xff] %v1688_v34 }
 0x107   :  { %v669_v24 = vadd.f32 %v1652_v13, %v668_v23 }
 0x109   :  { %v1672_v25 = vpop.f32.mrb[20].mxu0  ;;  %v670_v26 = vadd.f32 %v1662_v19, %v669_v24  ;;  %v1695_v51 = vpop.f32.mrb[20].mxu1 }
 0x10a   :  { %2823 = vst [vmem:[#allocation8_spill] sm:$0xff] %v1672_v25  ;;  %v1677_v28 = vpop.f32.mrb[21].mxu0  ;;  %2831 = vst [vmem:[#allocation16_spill] sm:$0xff] %v1695_v51  ;;  %v1699_v54 = vpop.f32.mrb[21].mxu1 }
 0x10b   :  { %2825 = vst [vmem:[#allocation10_spill] sm:$0xff] %v1677_v28  ;;  %v671_v30 = vadd.f32 %v670_v26, %v1677_v28  ;;  %v1682_v31 = vpop.f32.mrb[22].mxu0  ;;  %2833 = vst [vmem:[#allocation18_spill] sm:$0xff] %v1699_v54  ;;  %v1704_v0 = vpop.f32.mrb[22].mxu1 }
 0x10c   :  { %2826 = vst [vmem:[#allocation11_spill] sm:$0xff] %v1682_v31  ;;  %v1686_v33 = vpop.f32.mrb[23].mxu0  ;;  %2835 = vst [vmem:[#allocation20_spill] sm:$0xff] %v1704_v0  ;;  %v1708_v6 = vpop.f32.mrb[23].mxu1 }
 0x10d   :  { %2828 = vst [vmem:[#allocation13_spill] sm:$0xff] %v1686_v33  ;;  %v672_v39 = vadd.f32 %v671_v30, %v1686_v33  ;;  %2837 = vst [vmem:[#allocation22_spill] sm:$0xff] %v1708_v6 }
 0x10f   :  { %v673_v40 = vadd.f32 %v1672_v25, %v672_v39 }
 0x111   :  { %v1692_v42 = vpop.f32.mrb[24].mxu0  ;;  %v674_v46 = vadd.f32 %v1682_v31, %v673_v40  ;;  %v1715_v23 = vpop.f32.mrb[24].mxu1 }
 0x112   :  { %2830 = vst [vmem:[#allocation15_spill] sm:$0xff] %v1692_v42  ;;  %v1697_v52 = vpop.f32.mrb[25].mxu0  ;;  %2839 = vst [vmem:[#allocation24_spill] sm:$0xff] %v1715_v23  ;;  %v1719_v26 = vpop.f32.mrb[25].mxu1 }
 0x113   :  { %2832 = vst [vmem:[#allocation17_spill] sm:$0xff] %v1697_v52  ;;  %v675_v58 = vadd.f32 %v674_v46, %v1697_v52  ;;  %v1702_v63 = vpop.f32.mrb[26].mxu0  ;;  %2841 = vst [vmem:[#allocation26_spill] sm:$0xff] %v1719_v26  ;;  %v1724_v40 = vpop.f32.mrb[26].mxu1 }
 0x114   :  { %2834 = vst [vmem:[#allocation19_spill] sm:$0xff] %v1702_v63  ;;  %v1706_v2 = vpop.f32.mrb[27].mxu0  ;;  %2843 = vst [vmem:[#allocation28_spill] sm:$0xff] %v1724_v40 }
 0x115   :  { %2836 = vst [vmem:[#allocation21_spill] sm:$0xff] %v1706_v2  ;;  %v676_v11 = vadd.f32 %v675_v58, %v1706_v2  ;;  %v1728_v58 = vpop.f32.mrb[27].mxu1 }
 0x117   :  { %v677_v12 = vadd.f32 %v1692_v42, %v676_v11 }
 0x119   :  { %v1712_v14 = vpop.f32.mrb[28].mxu0  ;;  %v678_v18 = vadd.f32 %v1702_v63, %v677_v12  ;;  %v1733_v42 = vpop.f32.mrb[28].mxu1 }
 0x11a   :  { %2838 = vst [vmem:[#allocation23_spill] sm:$0xff] %v1712_v14  ;;  %v1717_v24 = vpop.f32.mrb[29].mxu0  ;;  %2845 = vst [vmem:[#allocation30_spill] sm:$0xff] %v1733_v42  ;;  %v1735_v2 = vpop.f32.mrb[29].mxu1 }
 0x11b   :  { %2840 = vst [vmem:[#allocation25_spill] sm:$0xff] %v1717_v24  ;;  %v679_v30 = vadd.f32 %v678_v18, %v1717_v24  ;;  %v1722_v39 = vpop.f32.mrb[30].mxu0  ;;  %2846 = vst [vmem:[#allocation31_spill] sm:$0xff] %v1735_v2  ;;  %v1738_v24 = vpop.f32.mrb[30].mxu1 }
 0x11c   :  { %2842 = vst [vmem:[#allocation27_spill] sm:$0xff] %v1722_v39  ;;  %v1726_v46 = vpop.f32.mrb[31].mxu0  ;;  %2847 = vst [vmem:[#allocation32_spill] sm:$0xff] %v1738_v24  ;;  %v1740_v52 = vpop.f32.mrb[31].mxu1 }
 0x11d   :  { %2844 = vst [vmem:[#allocation29_spill] sm:$0xff] %v1726_v46  ;;  %v680_v11 = vadd.f32 %v679_v30, %v1726_v46  ;;  %2848 = vst [vmem:[#allocation33_spill] sm:$0xff] %v1740_v52 }
 0x11f   :  { %v681_v12 = vadd.f32 %v1712_v14, %v680_v11 }
 0x121   :  { %v682_v63 = vadd.f32 %v1722_v39, %v681_v12 }
 0x123   :  { %v683_v18 = vadd.f32 %v682_v63, %v1599_v45 }
 0x125   :  { %v684_v31 = vadd.f32 %v683_v18, %v1608_v50 }
 0x127   :  { %v685_v25 = vadd.f32 %v1595_v43, %v684_v31 }
 0x129   :  { %v686_v30 = vadd.f32 %v1604_v48, %v685_v25 }
 0x12b   :  { %v687_v11 = vadd.f32 %v686_v30, %v1619_v57 }
 0x12d   :  { %v688_v12 = vadd.f32 %v687_v11, %v1628_v62 }
 0x12f   :  { %v689_v39 = vadd.f32 %v1615_v55, %v688_v12 }
 0x131   :  { %v690_v14 = vadd.f32 %v1624_v60, %v689_v39 }
 0x133   :  { %v691_v63 = vadd.f32 %v690_v14, %v1639_v5 }
 0x135   :  { %v692_v45 = vadd.f32 %v691_v63, %v1648_v10 }
 0x137   :  { %v693_v46 = vadd.f32 %v1635_v3, %v692_v45 }
 0x139   :  { %v694_v18 = vadd.f32 %v1644_v8, %v693_v46 }
 0x13b   :  { %v695_v31 = vadd.f32 %v694_v18, %v1659_v17 }
 0x13d   :  { %v696_v25 = vadd.f32 %v695_v31, %v1668_v22 }
 0x13f   :  { %v697_v30 = vadd.f32 %v1655_v15, %v696_v25 }
 0x141   :  { %v698_v11 = vadd.f32 %v1664_v20, %v697_v30 }
 0x143   :  { %v699_v12 = vadd.f32 %v698_v11, %v1679_v29 }
 0x145   :  { %v700_v39 = vadd.f32 %v699_v12, %v1688_v34 }
 0x147   :  { %v701_v14 = vadd.f32 %v1675_v27, %v700_v39 }
 0x149   :  { %v702_v63 = vadd.f32 %v1684_v32, %v701_v14 }
 0x14b   :  { %v703_v45 = vadd.f32 %v702_v63, %v1699_v54 }
 0x14d   :  { %v704_v46 = vadd.f32 %v703_v45, %v1708_v6 }
 0x14f   :  { %v705_v18 = vadd.f32 %v1695_v51, %v704_v46 }
 0x151   :  { %v706_v31 = vadd.f32 %v1704_v0, %v705_v18 }
 0x153   :  { %v707_v25 = vadd.f32 %v706_v31, %v1719_v26 }
 0x155   :  { %v708_v30 = vadd.f32 %v707_v25, %v1728_v58 }
 0x157   :  { %v709_v11 = vadd.f32 %v1715_v23, %v708_v30 }
 0x159   :  { %v710_v12 = vadd.f32 %v1724_v40, %v709_v11 }
 0x15b   :  { %v711_v39 = vadd.f32 %v710_v12, %v1735_v2 }
 0x15d   :  { %v712_v14 = vadd.f32 %v711_v39, %v1740_v52 }
 0x15f   :  { %v713_v63 = vadd.f32 %v1733_v42, %v712_v14 }
 0x161   :  { %v714_v45 = vadd.f32 %v1738_v24, %v713_v63 }
 0x163   :  { %v715_v6 = vrot.slane %v714_v45, 4 }
 0x165   :  { %v716_v46 = vadd.f32 %v715_v6, %v714_v45 }
 0x167   :  { %v717_v51 = vrot.slane %v716_v46, 2 }
 0x169   :  { %v718_v18 = vadd.f32 %v717_v51, %v716_v46 }
 0x16b   :  { %v719_v0 = vrot.slane %v718_v18, 1 }
 0x16d   :  { %v720_v31 = vadd.f32 %v719_v0, %v718_v18 }
 0x16f   :  { %v1773_v26 = vmul.f32 0.001953125, %v720_v31 }
 0x171   :  { %v722_v25 = vsub.f32 %v1583_v36, %v1773_v26  ;;  %v723_v30 = vsub.f32 %v1587_v38, %v1773_v26  ;;  %v724_v11 = vsub.f32 %v1581_v35, %v1773_v26  ;;  %v725_v6 = vsub.f32 %v1585_v37, %v1773_v26 }
 0x172   :  { %v726_v51 = vsub.f32 %v1597_v44, %v1773_v26  ;;  %v727_v63 = vsub.f32 %v1606_v49, %v1773_v26  ;;  %v728_v18 = vsub.f32 %v1592_v41, %v1773_v26  ;;  %v730_v44 = vsub.f32 %v1617_v56, %v1773_v26 }
 0x173   :  { %v786_v12 = vmul.f32 %v722_v25, %v722_v25  ;;  %v787_v39 = vmul.f32 %v723_v30, %v723_v30  ;;  %v788_v0 = vmul.f32 %v724_v11, %v724_v11  ;;  %v789_v45 = vmul.f32 %v725_v6, %v725_v6 }
 0x174   :  { %v790_v31 = vmul.f32 %v726_v51, %v726_v51  ;;  %v729_v25 = vsub.f32 %v1602_v47, %v1773_v26  ;;  %v791_v30 = vmul.f32 %v727_v63, %v727_v63  ;;  %v792_v11 = vmul.f32 %v728_v18, %v728_v18 }
 0x175   :  { %v850_v14 = vadd.f32 %v787_v39, %v786_v12  ;;  %v731_v39 = vsub.f32 %v1626_v61, %v1773_v26  ;;  %v794_v51 = vmul.f32 %v730_v44, %v730_v44 }
 0x176   :  { %v793_v6 = vmul.f32 %v729_v25, %v729_v25 }
 0x177   :  { %v851_v46 = vadd.f32 %v850_v14, %v788_v0  ;;  %v732_v14 = vsub.f32 %v1612_v53, %v1773_v26  ;;  %v795_v63 = vmul.f32 %v731_v39, %v731_v39 }
 0x179   :  { %v852_v35 = vadd.f32 %v851_v46, %v789_v45  ;;  %v733_v46 = vsub.f32 %v1622_v59, %v1773_v26  ;;  %v796_v18 = vmul.f32 %v732_v14, %v732_v14 }
 0x17b   :  { %v853_v37 = vadd.f32 %v852_v35, %v790_v31  ;;  %v734_v31 = vsub.f32 %v1637_v4, %v1773_v26  ;;  %v797_v25 = vmul.f32 %v733_v46, %v733_v46 }
 0x17d   :  { %v854_v12 = vadd.f32 %v853_v37, %v791_v30  ;;  %v735_v30 = vsub.f32 %v1646_v9, %v1773_v26  ;;  %v798_v44 = vmul.f32 %v734_v31, %v734_v31 }
 0x17f   :  { %v855_v0 = vadd.f32 %v854_v12, %v792_v11  ;;  %v736_v12 = vsub.f32 %v1632_v1, %v1773_v26  ;;  %v799_v39 = vmul.f32 %v735_v30, %v735_v30 }
 0x181   :  { %v856_v45 = vadd.f32 %v855_v0, %v793_v6  ;;  %v737_v0 = vsub.f32 %v1642_v7, %v1773_v26  ;;  %v800_v14 = vmul.f32 %v736_v12, %v736_v12 }
 0x183   :  { %v857_v35 = vadd.f32 %v856_v45, %v794_v51  ;;  %v738_v45 = vsub.f32 %v1657_v16, %v1773_v26  ;;  %v801_v46 = vmul.f32 %v737_v0, %v737_v0 }
 0x185   :  { %v858_v37 = vadd.f32 %v857_v35, %v795_v63  ;;  %v739_v35 = vsub.f32 %v1666_v21, %v1773_v26  ;;  %v802_v31 = vmul.f32 %v738_v45, %v738_v45 }
 0x187   :  { %v859_v11 = vadd.f32 %v858_v37, %v796_v18  ;;  %v740_v37 = vsub.f32 %v1652_v13, %v1773_v26  ;;  %v803_v30 = vmul.f32 %v739_v35, %v739_v35 }
 0x189   :  { %v860_v6 = vadd.f32 %v859_v11, %v797_v25  ;;  %v741_v11 = vsub.f32 %v1662_v19, %v1773_v26  ;;  %v804_v12 = vmul.f32 %v740_v37, %v740_v37 }
 0x18b   :  { %v861_v51 = vadd.f32 %v860_v6, %v798_v44  ;;  %v742_v6 = vsub.f32 %v1677_v28, %v1773_v26  ;;  %v805_v0 = vmul.f32 %v741_v11, %v741_v11 }
 0x18d   :  { %v862_v63 = vadd.f32 %v861_v51, %v799_v39  ;;  %v743_v51 = vsub.f32 %v1686_v33, %v1773_v26  ;;  %v806_v45 = vmul.f32 %v742_v6, %v742_v6 }
 0x18f   :  { %v863_v18 = vadd.f32 %v862_v63, %v800_v14  ;;  %v2849_v63 = vld [vmem:[#allocation8_spill] sm:$0xff]  ;;  %v807_v35 = vmul.f32 %v743_v51, %v743_v51 }
 0x190   :  { %v744_v13 = vsub.f32 %v2849_v63, %v1773_v26 }
 0x191   :  { %v864_v25 = vadd.f32 %v863_v18, %v801_v46  ;;  %v2850_v18 = vld [vmem:[#allocation11_spill] sm:$0xff] }
 0x192   :  { %v745_v19 = vsub.f32 %v2850_v18, %v1773_v26  ;;  %v808_v37 = vmul.f32 %v744_v13, %v744_v13 }
 0x193   :  { %v865_v44 = vadd.f32 %v864_v25, %v802_v31  ;;  %v2851_v25 = vld [vmem:[#allocation17_spill] sm:$0xff] }
 0x194   :  { %v746_v28 = vsub.f32 %v2851_v25, %v1773_v26  ;;  %v809_v11 = vmul.f32 %v745_v19, %v745_v19 }
 0x195   :  { %v866_v39 = vadd.f32 %v865_v44, %v803_v30  ;;  %v2852_v44 = vld [vmem:[#allocation21_spill] sm:$0xff] }
 0x196   :  { %v747_v33 = vsub.f32 %v2852_v44, %v1773_v26  ;;  %v810_v6 = vmul.f32 %v746_v28, %v746_v28 }
 0x197   :  { %v867_v14 = vadd.f32 %v866_v39, %v804_v12  ;;  %v2853_v39 = vld [vmem:[#allocation15_spill] sm:$0xff] }
 0x198   :  { %v748_v63 = vsub.f32 %v2853_v39, %v1773_v26  ;;  %v811_v51 = vmul.f32 %v747_v33, %v747_v33 }
 0x199   :  { %v868_v46 = vadd.f32 %v867_v14, %v805_v0  ;;  %v2854_v14 = vld [vmem:[#allocation19_spill] sm:$0xff] }
 0x19a   :  { %v749_v18 = vsub.f32 %v2854_v14, %v1773_v26  ;;  %v812_v13 = vmul.f32 %v748_v63, %v748_v63 }
 0x19b   :  { %v869_v31 = vadd.f32 %v868_v46, %v806_v45  ;;  %v2855_v46 = vld [vmem:[#allocation25_spill] sm:$0xff] }
 0x19c   :  { %v750_v25 = vsub.f32 %v2855_v46, %v1773_v26  ;;  %v813_v19 = vmul.f32 %v749_v18, %v749_v18 }
 0x19d   :  { %v870_v30 = vadd.f32 %v869_v31, %v807_v35  ;;  %v2856_v31 = vld [vmem:[#allocation29_spill] sm:$0xff] }
 0x19e   :  { %v751_v44 = vsub.f32 %v2856_v31, %v1773_v26  ;;  %v814_v28 = vmul.f32 %v750_v25, %v750_v25 }
 0x19f   :  { %v871_v12 = vadd.f32 %v870_v30, %v808_v37  ;;  %v2857_v30 = vld [vmem:[#allocation23_spill] sm:$0xff] }
 0x1a0   :  { %v752_v39 = vsub.f32 %v2857_v30, %v1773_v26  ;;  %v815_v33 = vmul.f32 %v751_v44, %v751_v44 }
 0x1a1   :  { %v872_v0 = vadd.f32 %v871_v12, %v809_v11  ;;  %v2858_v12 = vld [vmem:[#allocation27_spill] sm:$0xff] }
 0x1a2   :  { %v753_v14 = vsub.f32 %v2858_v12, %v1773_v26  ;;  %v816_v63 = vmul.f32 %v752_v39, %v752_v39 }
 0x1a3   :  { %v873_v45 = vadd.f32 %v872_v0, %v810_v6  ;;  %v2859_v0 = vld [vmem:[#allocation5_spill] sm:$0xff] }
 0x1a4   :  { %v754_v46 = vsub.f32 %v2859_v0, %v1773_v26  ;;  %v817_v18 = vmul.f32 %v753_v14, %v753_v14 }
 0x1a5   :  { %v874_v35 = vadd.f32 %v873_v45, %v811_v51  ;;  %v755_v45 = vsub.f32 %v1608_v50, %v1773_v26 }
 0x1a6   :  { %v818_v25 = vmul.f32 %v754_v46, %v754_v46 }
 0x1a7   :  { %v875_v37 = vadd.f32 %v874_v35, %v812_v13  ;;  %v756_v35 = vsub.f32 %v1595_v43, %v1773_v26  ;;  %v819_v44 = vmul.f32 %v755_v45, %v755_v45 }
 0x1a9   :  { %v876_v11 = vadd.f32 %v875_v37, %v813_v19  ;;  %v757_v37 = vsub.f32 %v1604_v48, %v1773_v26  ;;  %v820_v39 = vmul.f32 %v756_v35, %v756_v35 }
 0x1ab   :  { %v877_v6 = vadd.f32 %v876_v11, %v814_v28  ;;  %v758_v11 = vsub.f32 %v1619_v57, %v1773_v26  ;;  %v821_v14 = vmul.f32 %v757_v37, %v757_v37 }
 0x1ad   :  { %v878_v51 = vadd.f32 %v877_v6, %v815_v33  ;;  %v759_v6 = vsub.f32 %v1628_v62, %v1773_v26  ;;  %v822_v46 = vmul.f32 %v758_v11, %v758_v11 }
 0x1af   :  { %v879_v13 = vadd.f32 %v878_v51, %v816_v63  ;;  %v760_v51 = vsub.f32 %v1615_v55, %v1773_v26  ;;  %v823_v45 = vmul.f32 %v759_v6, %v759_v6 }
 0x1b1   :  { %v880_v19 = vadd.f32 %v879_v13, %v817_v18  ;;  %v761_v13 = vsub.f32 %v1624_v60, %v1773_v26  ;;  %v824_v35 = vmul.f32 %v760_v51, %v760_v51 }
 0x1b3   :  { %v881_v28 = vadd.f32 %v880_v19, %v818_v25  ;;  %v762_v19 = vsub.f32 %v1639_v5, %v1773_v26  ;;  %v825_v37 = vmul.f32 %v761_v13, %v761_v13 }
 0x1b5   :  { %v882_v33 = vadd.f32 %v881_v28, %v819_v44  ;;  %v763_v28 = vsub.f32 %v1648_v10, %v1773_v26  ;;  %v826_v11 = vmul.f32 %v762_v19, %v762_v19 }
 0x1b7   :  { %v883_v63 = vadd.f32 %v882_v33, %v820_v39  ;;  %v764_v33 = vsub.f32 %v1635_v3, %v1773_v26  ;;  %v827_v6 = vmul.f32 %v763_v28, %v763_v28 }
 0x1b9   :  { %v884_v18 = vadd.f32 %v883_v63, %v821_v14  ;;  %v765_v63 = vsub.f32 %v1644_v8, %v1773_v26  ;;  %v828_v51 = vmul.f32 %v764_v33, %v764_v33 }
 0x1bb   :  { %v885_v25 = vadd.f32 %v884_v18, %v822_v46  ;;  %v766_v18 = vsub.f32 %v1659_v17, %v1773_v26  ;;  %v829_v13 = vmul.f32 %v765_v63, %v765_v63 }
 0x1bd   :  { %v886_v44 = vadd.f32 %v885_v25, %v823_v45  ;;  %v767_v25 = vsub.f32 %v1668_v22, %v1773_v26  ;;  %v830_v19 = vmul.f32 %v766_v18, %v766_v18 }
 0x1bf   :  { %v887_v39 = vadd.f32 %v886_v44, %v824_v35  ;;  %v768_v44 = vsub.f32 %v1655_v15, %v1773_v26  ;;  %v831_v28 = vmul.f32 %v767_v25, %v767_v25 }
 0x1c1   :  { %v888_v14 = vadd.f32 %v887_v39, %v825_v37  ;;  %v769_v39 = vsub.f32 %v1664_v20, %v1773_v26  ;;  %v832_v33 = vmul.f32 %v768_v44, %v768_v44 }
 0x1c3   :  { %v889_v46 = vadd.f32 %v888_v14, %v826_v11  ;;  %v770_v14 = vsub.f32 %v1679_v29, %v1773_v26  ;;  %v833_v63 = vmul.f32 %v769_v39, %v769_v39 }
 0x1c5   :  { %v890_v45 = vadd.f32 %v889_v46, %v827_v6  ;;  %v771_v46 = vsub.f32 %v1688_v34, %v1773_v26  ;;  %v834_v18 = vmul.f32 %v770_v14, %v770_v14 }
 0x1c7   :  { %v891_v35 = vadd.f32 %v890_v45, %v828_v51  ;;  %v772_v45 = vsub.f32 %v1675_v27, %v1773_v26  ;;  %v835_v25 = vmul.f32 %v771_v46, %v771_v46 }
 0x1c9   :  { %v892_v37 = vadd.f32 %v891_v35, %v829_v13  ;;  %v773_v35 = vsub.f32 %v1684_v32, %v1773_v26  ;;  %v836_v44 = vmul.f32 %v772_v45, %v772_v45 }
 0x1cb   :  { %v893_v11 = vadd.f32 %v892_v37, %v830_v19  ;;  %v774_v37 = vsub.f32 %v1699_v54, %v1773_v26  ;;  %v837_v39 = vmul.f32 %v773_v35, %v773_v35 }
 0x1cd   :  { %v894_v6 = vadd.f32 %v893_v11, %v831_v28  ;;  %v2860_v11 = vld [vmem:[#allocation22_spill] sm:$0xff]  ;;  %v838_v14 = vmul.f32 %v774_v37, %v774_v37 }
 0x1ce   :  { %v775_v34 = vsub.f32 %v2860_v11, %v1773_v26 }
 0x1cf   :  { %v895_v51 = vadd.f32 %v894_v6, %v832_v33  ;;  %v2861_v6 = vld [vmem:[#allocation16_spill] sm:$0xff] }
 0x1d0   :  { %v776_v27 = vsub.f32 %v2861_v6, %v1773_v26  ;;  %v839_v46 = vmul.f32 %v775_v34, %v775_v34 }
 0x1d1   :  { %v896_v13 = vadd.f32 %v895_v51, %v833_v63  ;;  %v2862_v51 = vld [vmem:[#allocation20_spill] sm:$0xff] }
 0x1d2   :  { %v777_v32 = vsub.f32 %v2862_v51, %v1773_v26  ;;  %v840_v45 = vmul.f32 %v776_v27, %v776_v27 }
 0x1d3   :  { %v897_v19 = vadd.f32 %v896_v13, %v834_v18  ;;  %v2863_v13 = vld [vmem:[#allocation26_spill] sm:$0xff] }
 0x1d4   :  { %v778_v54 = vsub.f32 %v2863_v13, %v1773_v26  ;;  %v841_v35 = vmul.f32 %v777_v32, %v777_v32 }
 0x1d5   :  { %v898_v28 = vadd.f32 %v897_v19, %v835_v25  ;;  %v779_v19 = vsub.f32 %v1728_v58, %v1773_v26 }
 0x1d6   :  { %v842_v37 = vmul.f32 %v778_v54, %v778_v54 }
 0x1d7   :  { %v899_v33 = vadd.f32 %v898_v28, %v836_v44  ;;  %v780_v28 = vsub.f32 %v1715_v23, %v1773_v26  ;;  %v843_v34 = vmul.f32 %v779_v19, %v779_v19 }
 0x1d9   :  { %v900_v63 = vadd.f32 %v899_v33, %v837_v39  ;;  %v781_v33 = vsub.f32 %v1724_v40, %v1773_v26  ;;  %v844_v27 = vmul.f32 %v780_v28, %v780_v28 }
 0x1db   :  { %v901_v18 = vadd.f32 %v900_v63, %v838_v14  ;;  %v782_v63 = vsub.f32 %v1735_v2, %v1773_v26  ;;  %v845_v32 = vmul.f32 %v781_v33, %v781_v33 }
 0x1dd   :  { %v902_v25 = vadd.f32 %v901_v18, %v839_v46  ;;  %v783_v18 = vsub.f32 %v1740_v52, %v1773_v26  ;;  %v846_v54 = vmul.f32 %v782_v63, %v782_v63 }
 0x1df   :  { %v903_v44 = vadd.f32 %v902_v25, %v840_v45  ;;  %v784_v25 = vsub.f32 %v1733_v42, %v1773_v26  ;;  %v847_v19 = vmul.f32 %v783_v18, %v783_v18 }
 0x1e1   :  { %v904_v39 = vadd.f32 %v903_v44, %v841_v35  ;;  %v785_v44 = vsub.f32 %v1738_v24, %v1773_v26 }
 0x1e3   :  { %v905_v14 = vadd.f32 %v904_v39, %v842_v37  ;;  %v848_v39 = vmul.f32 %v784_v25, %v784_v25  ;;  %v849_v2 = vmul.f32 %v785_v44, %v785_v44  ;;  %v932_v25 = vlaneseq  ;;  %v2877_v44 = vld [vmem:[#allocation25_spill] sm:$0xff] }
 0x1e5   :  { %v906_v46 = vadd.f32 %v905_v14, %v843_v34 }
 0x1e7   :  { %v907_v45 = vadd.f32 %v906_v46, %v844_v27  ;;  %v919_v27 = vmul.f32 0.0, %v1773_v26 }
 0x1e9   :  { %v908_v35 = vadd.f32 %v907_v45, %v845_v32  ;;  %v920_v63 = vmul.f32 %v919_v27, %v1773_v26 }
 0x1eb   :  { %v909_v37 = vadd.f32 %v908_v35, %v846_v54  ;;  %v1905_v54 = vshrl.u32 %v932_v25, 7  ;;  %v1914_v35 = vld [vmem:[%s2767_s3] sm:$0x1]  ;;  %v2870_v25 = vld [vmem:[#allocation13_spill] sm:$0xff] }
 0x1ed   :  { %v910_v40 = vadd.f32 %v909_v37, %v847_v19 }
 0x1ef   :  { %v911_v28 = vadd.f32 %v910_v40, %v848_v39  ;;  %v2864_v39 = vld [vmem:[#allocation2_spill] sm:$0xff] }
 0x1f1   :  { %v912_v34 = vadd.f32 %v911_v28, %v849_v2  ;;  %v924_v2 = vld [vmem:[%s2766_s2] sm:$0x1] }
 0x1f3   :  { %v913_v14 = vrot.slane %v912_v34, 4 }
 0x1f5   :  { %v914_v23 = vadd.f32 %v913_v14, %v912_v34  ;;  %v2866_v14 = vld [vmem:[#allocation4_spill] sm:$0xff] }
 0x1f7   :  { %v915_v52 = vrot.slane %v914_v23, 2 }
 0x1f9   :  { %v916_v33 = vadd.f32 %v915_v52, %v914_v23  ;;  %v2816_v52 = vsub.s32 0, %v1905_v54 }
 0x1fb   :  { %v917_v46 = vrot.slane %v916_v33, 1 }
 0x1fd   :  { %v918_v42 = vadd.f32 %v917_v46, %v916_v33 }
 0x1ff   :  { %v921_v32 = vsub.f32 %v918_v42, %v920_v63 }
 0x201   :  { %v922_v45 = vmul.f32 0.001953125, %v921_v32  ;;  %v2867_v32 = vld [vmem:[#allocation6_spill] sm:$0xff] }
 0x203   :  { %v923_v24 = vmax.f32 %v922_v45, 0.0  ;;  %v2868_v45 = vld [vmem:[#allocation7_spill] sm:$0xff] }
 0x205   :  { %v925_v18 = vadd.f32 1e-05, %v923_v24 }
 0x207   :  { %1417 = vrsqrt.f32 %v925_v18  ;;  %v2869_v18 = vld [vmem:[#allocation10_spill] sm:$0xff] }
 0x211   :  { %v1418_v23 = vpop.eup %1417 }
 0x212   :  { %v927_v40 = vmul.f32 %v1418_v23, %v924_v2  ;;  %v2871_v2 = vld [vmem:[#allocation8_spill] sm:$0xff]  ;;  %v2872_v23 = vld [vmem:[#allocation11_spill] sm:$0xff] }
 0x214   :  { %v1917_v42 = vmul.f32 %v927_v40, %v1773_v26  ;;  %v1921_v24 = vrot.slane %v927_v40, %v2816_v52  ;;  %v2865_v26 = vld [vmem:[#allocation3_spill] sm:$0xff]  ;;  %v2881_v52 = vld [vmem:[#allocation14_spill] sm:$0xff] }
 0x216   :  { %v1927_v19 = vmul.f32 %v1921_v24, %v1583_v36  ;;  %v1931_v37 = vmul.f32 %v1921_v24, %v1587_v38  ;;  %v1935_v28 = vmul.f32 %v2864_v39, %v1921_v24  ;;  %v1939_v34 = vmul.f32 %v2865_v26, %v1921_v24  ;;  %v2873_v39 = vld [vmem:[#allocation17_spill] sm:$0xff] }
 0x217   :  { %v1943_v33 = vmul.f32 %v1921_v24, %v2866_v14  ;;  %v1947_v36 = vmul.f32 %v1921_v24, %v1606_v49  ;;  %v1951_v38 = vmul.f32 %v1592_v41, %v1921_v24  ;;  %v1955_v27 = vmul.f32 %v1602_v47, %v1921_v24  ;;  %v2874_v14 = vld [vmem:[#allocation21_spill] sm:$0xff] }
 0x218   :  { %v1959_v46 = vmul.f32 %v1921_v24, %v1617_v56  ;;  %v1963_v63 = vmul.f32 %v1921_v24, %v1626_v61  ;;  %v1967_v49 = vmul.f32 %v1612_v53, %v1921_v24  ;;  %v1971_v41 = vmul.f32 %v1622_v59, %v1921_v24 }
 0x219   :  { %v1975_v47 = vmul.f32 %v1921_v24, %v1637_v4  ;;  %v1979_v56 = vmul.f32 %v1921_v24, %v1646_v9  ;;  %v1983_v61 = vmul.f32 %v1632_v1, %v1921_v24  ;;  %v1987_v53 = vmul.f32 %v1642_v7, %v1921_v24 }
 0x21a   :  { %v1991_v59 = vmul.f32 %v1921_v24, %v1657_v16  ;;  %v1995_v4 = vmul.f32 %v1921_v24, %v1666_v21  ;;  %v1999_v9 = vmul.f32 %v2867_v32, %v1921_v24  ;;  %v2003_v1 = vmul.f32 %v2868_v45, %v1921_v24  ;;  %v2875_v45 = vld [vmem:[#allocation15_spill] sm:$0xff] }
 0x21b   :  { %v2007_v7 = vmul.f32 %v1921_v24, %v2869_v18  ;;  %v2011_v16 = vmul.f32 %v1921_v24, %v2870_v25  ;;  %v2015_v21 = vmul.f32 %v2871_v2, %v1921_v24  ;;  %v2019_v40 = vmul.f32 %v2872_v23, %v1921_v24  ;;  %v2876_v25 = vld [vmem:[#allocation19_spill] sm:$0xff] }
 0x21c   :  { %v2023_v26 = vmul.f32 %v1921_v24, %v2873_v39  ;;  %v2027_v32 = vmul.f32 %v1921_v24, %v2874_v14  ;;  %v2031_v18 = vmul.f32 %v2875_v45, %v1921_v24  ;;  %v2035_v2 = vmul.f32 %v2876_v25, %v1921_v24 }
 0x21d   :  { %v2039_v23 = vmul.f32 %v1921_v24, %v2877_v44  ;;  %v2043_v39 = vmul.f32 %v1921_v24, %v2856_v31  ;;  %v2047_v14 = vmul.f32 %v2857_v30, %v1921_v24  ;;  %v2051_v45 = vmul.f32 %v2858_v12, %v1921_v24 }
 0x21e   :  { %v2055_v25 = vmul.f32 %v1921_v24, %v2859_v0  ;;  %v2059_v44 = vmul.f32 %v1921_v24, %v1608_v50  ;;  %v2063_v31 = vmul.f32 %v1595_v43, %v1921_v24  ;;  %v2067_v30 = vmul.f32 %v1604_v48, %v1921_v24 }
 0x21f   :  { %v2071_v12 = vmul.f32 %v1921_v24, %v1619_v57  ;;  %v2075_v0 = vmul.f32 %v1921_v24, %v1628_v62  ;;  %v2079_v50 = vmul.f32 %v1615_v55, %v1921_v24  ;;  %v2083_v43 = vmul.f32 %v1624_v60, %v1921_v24 }
 0x220   :  { %v2087_v48 = vmul.f32 %v1921_v24, %v1639_v5  ;;  %v2091_v57 = vmul.f32 %v1921_v24, %v1648_v10  ;;  %v2095_v62 = vmul.f32 %v1635_v3, %v1921_v24  ;;  %v2099_v55 = vmul.f32 %v1644_v8, %v1921_v24 }
 0x221   :  { %v2103_v60 = vmul.f32 %v1921_v24, %v1659_v17  ;;  %v2107_v5 = vmul.f32 %v1921_v24, %v1668_v22  ;;  %v2111_v10 = vmul.f32 %v1655_v15, %v1921_v24  ;;  %v2115_v3 = vmul.f32 %v1664_v20, %v1921_v24 }
 0x222   :  { %v2119_v8 = vmul.f32 %v1921_v24, %v1679_v29  ;;  %v2123_v17 = vmul.f32 %v1921_v24, %v2881_v52  ;;  %v2139_v29 = vmul.f32 %v1921_v24, %v2860_v11  ;;  %v2143_v52 = vmul.f32 %v2861_v6, %v1921_v24 }
 0x223   :  { %2878 = vst [vmem:[#allocation29_spill] sm:$0xff] %v2103_v60  ;;  %2879 = vst [vmem:[#allocation23_spill] sm:$0xff] %v2107_v5  ;;  %v2882_v60 = vld [vmem:[#allocation9_spill] sm:$0xff]  ;;  %v2883_v5 = vld [vmem:[#allocation12_spill] sm:$0xff] }
 0x224   :  { %2880 = vst [vmem:[#allocation27_spill] sm:$0xff] %v2111_v10  ;;  %v2127_v22 = vmul.f32 %v2882_v60, %v1921_v24  ;;  %v2131_v15 = vmul.f32 %v2883_v5, %v1921_v24  ;;  %v2884_v10 = vld [vmem:[#allocation18_spill] sm:$0xff]  ;;  %2886 = vst [vmem:[#allocation22_spill] sm:$0xff] %v2139_v29  ;;  %v2147_v60 = vmul.f32 %v2862_v51, %v1921_v24  ;;  %v2893_v29 = vld [vmem:[#allocation28_spill] sm:$0xff] }
 0x225   :  { %v2135_v20 = vmul.f32 %v1921_v24, %v2884_v10  ;;  %2887 = vst [vmem:[#allocation16_spill] sm:$0xff] %v2143_v52  ;;  %v2151_v5 = vmul.f32 %v1921_v24, %v2863_v13  ;;  %v2155_v10 = vmul.f32 %v1921_v24, %v1728_v58  ;;  %v2163_v6 = vmul.f32 %v2893_v29, %v1921_v24  ;;  %v2895_v52 = vld [vmem:[#allocation31_spill] sm:$0xff] }
 0x226   :  { %2888 = vst [vmem:[#allocation20_spill] sm:$0xff] %v2147_v60  ;;  %v2167_v51 = vmul.f32 %v1921_v24, %v2895_v52  ;;  %v2896_v60 = vld [vmem:[#allocation33_spill] sm:$0xff]  ;;  %v2900_v29 = vsub.f32 %v1914_v35, %v1917_v42 }
 0x227   :  { %2885 = vst [vmem:[#allocation5_spill] sm:$0xff] %v2135_v20  ;;  %2889 = vst [vmem:[#allocation26_spill] sm:$0xff] %v2151_v5  ;;  %v2891_v20 = vld [vmem:[#allocation24_spill] sm:$0xff]  ;;  %v2171_v13 = vmul.f32 %v1921_v24, %v2896_v60  ;;  %v2897_v5 = vld [vmem:[#allocation30_spill] sm:$0xff] }
 0x228   :  { %2890 = vst [vmem:[#allocation2_spill] sm:$0xff] %v2155_v10  ;;  %v2159_v11 = vmul.f32 %v2891_v20, %v1921_v24  ;;  %2894 = vst [vmem:[#allocation4_spill] sm:$0xff] %v2163_v6  ;;  %v2175_v58 = vmul.f32 %v2897_v5, %v1921_v24  ;;  %v2898_v10 = vld [vmem:[#allocation32_spill] sm:$0xff] }
 0x229   :  { %v2179_v20 = vmul.f32 %v2898_v10, %v1921_v24 }
 0x22a   :  { %2892 = vst [vmem:[#allocation3_spill] sm:$0xff] %v2159_v11  ;;  %v2899_v11 = vsub.s32 0, %v1905_v54 }
 0x22b   :  { %v2903_v10 = vld [vmem:[#allocation27_spill] sm:$0xff] }
 0x22c   :  { %v2186_v6 = vrot.slane %v2900_v29, %v2899_v11 }
 0x22e   :  { %v2190_v52 = vadd.f32 %v2186_v6, %v1927_v19  ;;  %v2194_v60 = vadd.f32 %v2186_v6, %v1931_v37  ;;  %v2198_v5 = vadd.f32 %v2186_v6, %v1935_v28  ;;  %v2202_v54 = vadd.f32 %v2186_v6, %v1939_v34 }
 0x22f   :  { %v2206_v35 = vadd.f32 %v2186_v6, %v1943_v33  ;;  %v2210_v42 = vadd.f32 %v2186_v6, %v1947_v36  ;;  %v2214_v24 = vadd.f32 %v2186_v6, %v1951_v38  ;;  %v2218_v19 = vadd.f32 %v2186_v6, %v1955_v27 }
 0x230   :  { %v2222_v37 = vadd.f32 %v2186_v6, %v1959_v46  ;;  %v2226_v28 = vadd.f32 %v2186_v6, %v1963_v63  ;;  %v2230_v34 = vadd.f32 %v2186_v6, %v1967_v49  ;;  %v2234_v33 = vadd.f32 %v2186_v6, %v1971_v41 }
 0x231   :  { %v2238_v36 = vadd.f32 %v2186_v6, %v1975_v47  ;;  %v2242_v38 = vadd.f32 %v2186_v6, %v1979_v56  ;;  %v2246_v27 = vadd.f32 %v2186_v6, %v1983_v61  ;;  %v2250_v46 = vadd.f32 %v2186_v6, %v1987_v53 }
 0x232   :  { %v2254_v63 = vadd.f32 %v2186_v6, %v1991_v59  ;;  %v2258_v49 = vadd.f32 %v2186_v6, %v1995_v4  ;;  %v2262_v41 = vadd.f32 %v2186_v6, %v1999_v9  ;;  %v2266_v47 = vadd.f32 %v2186_v6, %v2003_v1 }
 0x233   :  { %v2270_v56 = vadd.f32 %v2186_v6, %v2007_v7  ;;  %v2274_v61 = vadd.f32 %v2186_v6, %v2011_v16  ;;  %v2278_v53 = vadd.f32 %v2186_v6, %v2015_v21  ;;  %v2282_v59 = vadd.f32 %v2186_v6, %v2019_v40 }
 0x234   :  { %v2286_v4 = vadd.f32 %v2186_v6, %v2023_v26  ;;  %v2290_v9 = vadd.f32 %v2186_v6, %v2027_v32  ;;  %v2294_v1 = vadd.f32 %v2186_v6, %v2031_v18  ;;  %v2298_v7 = vadd.f32 %v2186_v6, %v2035_v2 }
 0x235   :  { %v2302_v16 = vadd.f32 %v2186_v6, %v2039_v23  ;;  %v2306_v21 = vadd.f32 %v2186_v6, %v2043_v39  ;;  %v2310_v40 = vadd.f32 %v2186_v6, %v2047_v14  ;;  %v2314_v26 = vadd.f32 %v2186_v6, %v2051_v45 }
 0x236   :  { %v2318_v32 = vadd.f32 %v2186_v6, %v2055_v25  ;;  %v2322_v18 = vadd.f32 %v2186_v6, %v2059_v44  ;;  %v2326_v2 = vadd.f32 %v2186_v6, %v2063_v31  ;;  %v2330_v23 = vadd.f32 %v2186_v6, %v2067_v30 }
 0x237   :  { %v2334_v39 = vadd.f32 %v2186_v6, %v2071_v12  ;;  %v2338_v14 = vadd.f32 %v2186_v6, %v2075_v0  ;;  %v2342_v45 = vadd.f32 %v2186_v6, %v2079_v50  ;;  %v2346_v25 = vadd.f32 %v2186_v6, %v2083_v43  ;;  %v2901_v0 = vld [vmem:[#allocation29_spill] sm:$0xff]  ;;  %v2902_v43 = vld [vmem:[#allocation23_spill] sm:$0xff] }
 0x238   :  { %v2350_v44 = vadd.f32 %v2186_v6, %v2087_v48  ;;  %v2354_v31 = vadd.f32 %v2186_v6, %v2091_v57  ;;  %v2358_v30 = vadd.f32 %v2186_v6, %v2095_v62  ;;  %v2362_v12 = vadd.f32 %v2186_v6, %v2099_v55 }
 0x239   :  { %v2366_v50 = vadd.f32 %v2186_v6, %v2901_v0  ;;  %v2370_v48 = vadd.f32 %v2186_v6, %v2902_v43  ;;  %v2374_v57 = vadd.f32 %v2186_v6, %v2903_v10  ;;  %v2378_v62 = vadd.f32 %v2186_v6, %v2115_v3  ;;  %v2908_v43 = vld [vmem:[#allocation5_spill] sm:$0xff]  ;;  %v2910_v10 = vld [vmem:[#allocation22_spill] sm:$0xff] }
 0x23a   :  { %v2382_v55 = vadd.f32 %v2186_v6, %v2119_v8  ;;  %v2386_v11 = vadd.f32 %v2186_v6, %v2123_v17  ;;  %v2390_v29 = vadd.f32 %v2186_v6, %v2127_v22  ;;  %v2394_v0 = vadd.f32 %v2186_v6, %v2131_v15 }
 0x23b   :  { %v2398_v3 = vadd.f32 %v2186_v6, %v2908_v43  ;;  %v2402_v8 = vadd.f32 %v2186_v6, %v2910_v10 }
 0x23c   :  { %2904 = vst [vmem:[#allocation6_spill] sm:$0xff] %v2382_v55  ;;  %2905 = vst [vmem:[#allocation7_spill] sm:$0xff] %v2386_v11  ;;  %v2912_v55 = vld [vmem:[#allocation16_spill] sm:$0xff] }
 0x23d   :  { %2906 = vst [vmem:[#allocation10_spill] sm:$0xff] %v2390_v29  ;;  %2907 = vst [vmem:[#allocation13_spill] sm:$0xff] %v2394_v0  ;;  %v2406_v17 = vadd.f32 %v2186_v6, %v2912_v55  ;;  %v2913_v11 = vld [vmem:[#allocation20_spill] sm:$0xff]  ;;  %v2914_v29 = vld [vmem:[#allocation26_spill] sm:$0xff] }
 0x23e   :  { %2909 = vst [vmem:[#allocation8_spill] sm:$0xff] %v2398_v3  ;;  %2911 = vst [vmem:[#allocation11_spill] sm:$0xff] %v2402_v8  ;;  %v2410_v22 = vadd.f32 %v2186_v6, %v2913_v11  ;;  %v2414_v15 = vadd.f32 %v2186_v6, %v2914_v29  ;;  %v2915_v0 = vld [vmem:[#allocation2_spill] sm:$0xff]  ;;  %v2916_v3 = vld [vmem:[#allocation3_spill] sm:$0xff]  ;;  %v2430_v11 = vadd.f32 %v2186_v6, %v2167_v51  ;;  %v1074_v51 = vmax.f32 %v2202_v54, 0.0 }
 0x23f   :  { %v2418_v43 = vadd.f32 %v2186_v6, %v2915_v0  ;;  %v2422_v10 = vadd.f32 %v2186_v6, %v2916_v3  ;;  %v2918_v8 = vld [vmem:[#allocation4_spill] sm:$0xff]  ;;  %v2434_v29 = vadd.f32 %v2186_v6, %v2171_v13  ;;  %v2438_v0 = vadd.f32 %v2186_v6, %v2175_v58 }
 0x240   :  { %v2426_v55 = vadd.f32 %v2186_v6, %v2918_v8  ;;  %2920 = vst [vmem:[#allocation15_spill] sm:$0xff] %v2430_v11  ;;  %v2442_v3 = vadd.f32 %v2186_v6, %v2179_v20  ;;  %v1072_v8 = vmax.f32 %v2194_v60, 0.0  ;;  %v1075_v11 = vmax.f32 %v2206_v35, 0.0  ;;  %1139 = vst.msk [vmem:[%s2768_s4 + $0x18] sm:$0xff] %vm1135_vm1, %v1074_v51 }
 0x241   :  { %2917 = vst [vmem:[#allocation17_spill] sm:$0xff] %v2422_v10  ;;  %2921 = vst [vmem:[#allocation19_spill] sm:$0xff] %v2434_v29  ;;  %v1071_v10 = vmax.f32 %v2190_v52, 0.0  ;;  %v1076_v13 = vmax.f32 %v2210_v42, 0.0  ;;  %v1077_v29 = vmax.f32 %v2214_v24, 0.0  ;;  %v1078_v58 = vmax.f32 %v2218_v19, 0.0 }
 0x242   :  { %2919 = vst [vmem:[#allocation21_spill] sm:$0xff] %v2426_v55  ;;  %2922 = vst [vmem:[#allocation25_spill] sm:$0xff] %v2438_v0  ;;  %v1073_v55 = vmax.f32 %v2198_v5, 0.0  ;;  %v1079_v0 = vmax.f32 %v2222_v37, 0.0  ;;  %v1080_v6 = vmax.f32 %v2226_v28, 0.0  ;;  %v1081_v20 = vmax.f32 %v2230_v34, 0.0 }
 0x243   :  { %v1082_v52 = vmax.f32 %v2234_v33, 0.0  ;;  %1136 = vst.msk [vmem:[%s2768_s4] sm:$0xff] %vm1135_vm1, %v1071_v10  ;;  %1137 = vst.msk [vmem:[%s2768_s4 + $0x8] sm:$0xff] %vm1135_vm1, %v1072_v8  ;;  %v1083_v60 = vmax.f32 %v2238_v36, 0.0  ;;  %v1084_v5 = vmax.f32 %v2242_v38, 0.0  ;;  %v1085_v54 = vmax.f32 %v2246_v27, 0.0 }
 0x244   :  { %1138 = vst.msk [vmem:[%s2768_s4 + $0x10] sm:$0xff] %vm1135_vm1, %v1073_v55  ;;  %v1086_v35 = vmax.f32 %v2250_v46, 0.0  ;;  %1140 = vst.msk [vmem:[%s2768_s4 + $0x20] sm:$0xff] %vm1135_vm1, %v1075_v11  ;;  %v1087_v42 = vmax.f32 %v2254_v63, 0.0  ;;  %v1088_v24 = vmax.f32 %v2258_v49, 0.0  ;;  %v1089_v19 = vmax.f32 %v2262_v41, 0.0 }
 0x245   :  { %1141 = vst.msk [vmem:[%s2768_s4 + $0x28] sm:$0xff] %vm1135_vm1, %v1076_v13  ;;  %1142 = vst.msk [vmem:[%s2768_s4 + $0x30] sm:$0xff] %vm1135_vm1, %v1077_v29  ;;  %v1090_v37 = vmax.f32 %v2266_v47, 0.0  ;;  %v1091_v28 = vmax.f32 %v2270_v56, 0.0  ;;  %v1092_v34 = vmax.f32 %v2274_v61, 0.0  ;;  %v1093_v33 = vmax.f32 %v2278_v53, 0.0 }
 0x246   :  { %1143 = vst.msk [vmem:[%s2768_s4 + $0x38] sm:$0xff] %vm1135_vm1, %v1078_v58  ;;  %1144 = vst.msk [vmem:[%s2768_s4 + $0x40] sm:$0xff] %vm1135_vm1, %v1079_v0  ;;  %v1094_v36 = vmax.f32 %v2282_v59, 0.0  ;;  %v1095_v38 = vmax.f32 %v2286_v4, 0.0  ;;  %v1096_v27 = vmax.f32 %v2290_v9, 0.0  ;;  %v1097_v46 = vmax.f32 %v2294_v1, 0.0 }
 0x247   :  { %1145 = vst.msk [vmem:[%s2768_s4 + $0x48] sm:$0xff] %vm1135_vm1, %v1080_v6  ;;  %1146 = vst.msk [vmem:[%s2768_s4 + $0x50] sm:$0xff] %vm1135_vm1, %v1081_v20  ;;  %v1098_v63 = vmax.f32 %v2298_v7, 0.0  ;;  %v1099_v49 = vmax.f32 %v2302_v16, 0.0  ;;  %v1100_v41 = vmax.f32 %v2306_v21, 0.0  ;;  %v1101_v47 = vmax.f32 %v2310_v40, 0.0 }
 0x248   :  { %1147 = vst.msk [vmem:[%s2768_s4 + $0x58] sm:$0xff] %vm1135_vm1, %v1082_v52  ;;  %1148 = vst.msk [vmem:[%s2768_s4 + $0x60] sm:$0xff] %vm1135_vm1, %v1083_v60  ;;  %v1102_v56 = vmax.f32 %v2314_v26, 0.0  ;;  %v1103_v61 = vmax.f32 %v2318_v32, 0.0  ;;  %v1104_v53 = vmax.f32 %v2322_v18, 0.0  ;;  %v1105_v59 = vmax.f32 %v2326_v2, 0.0 }
 0x249   :  { %1149 = vst.msk [vmem:[%s2768_s4 + $0x68] sm:$0xff] %vm1135_vm1, %v1084_v5  ;;  %1150 = vst.msk [vmem:[%s2768_s4 + $0x70] sm:$0xff] %vm1135_vm1, %v1085_v54  ;;  %v1106_v4 = vmax.f32 %v2330_v23, 0.0  ;;  %v1107_v9 = vmax.f32 %v2334_v39, 0.0  ;;  %v1108_v1 = vmax.f32 %v2338_v14, 0.0  ;;  %v1109_v7 = vmax.f32 %v2342_v45, 0.0 }
 0x24a   :  { %1151 = vst.msk [vmem:[%s2768_s4 + $0x78] sm:$0xff] %vm1135_vm1, %v1086_v35  ;;  %1152 = vst.msk [vmem:[%s2768_s4 + $0x80] sm:$0xff] %vm1135_vm1, %v1087_v42  ;;  %v1110_v16 = vmax.f32 %v2346_v25, 0.0  ;;  %v1111_v21 = vmax.f32 %v2350_v44, 0.0  ;;  %v1112_v40 = vmax.f32 %v2354_v31, 0.0  ;;  %v1113_v26 = vmax.f32 %v2358_v30, 0.0 }
 0x24b   :  { %1153 = vst.msk [vmem:[%s2768_s4 + $0x88] sm:$0xff] %vm1135_vm1, %v1088_v24  ;;  %1154 = vst.msk [vmem:[%s2768_s4 + $0x90] sm:$0xff] %vm1135_vm1, %v1089_v19  ;;  %v1114_v32 = vmax.f32 %v2362_v12, 0.0  ;;  %v1115_v18 = vmax.f32 %v2366_v50, 0.0  ;;  %v1116_v2 = vmax.f32 %v2370_v48, 0.0  ;;  %v1117_v23 = vmax.f32 %v2374_v57, 0.0 }
 0x24c   :  { %1155 = vst.msk [vmem:[%s2768_s4 + $0x98] sm:$0xff] %vm1135_vm1, %v1090_v37  ;;  %1156 = vst.msk [vmem:[%s2768_s4 + $0xa0] sm:$0xff] %vm1135_vm1, %v1091_v28  ;;  %v1118_v39 = vmax.f32 %v2378_v62, 0.0  ;;  %v2923_v14 = vld [vmem:[#allocation6_spill] sm:$0xff]  ;;  %v2924_v25 = vld [vmem:[#allocation7_spill] sm:$0xff]  ;;  %v1125_v55 = vmax.f32 %v2406_v17, 0.0 }
 0x24d   :  { %1157 = vst.msk [vmem:[%s2768_s4 + $0xa8] sm:$0xff] %vm1135_vm1, %v1092_v34  ;;  %1158 = vst.msk [vmem:[%s2768_s4 + $0xb0] sm:$0xff] %vm1135_vm1, %v1093_v33  ;;  %v1119_v45 = vmax.f32 %v2923_v14, 0.0  ;;  %v1120_v44 = vmax.f32 %v2924_v25, 0.0  ;;  %v2925_v31 = vld [vmem:[#allocation10_spill] sm:$0xff]  ;;  %v2926_v12 = vld [vmem:[#allocation13_spill] sm:$0xff] }
 0x24e   :  { %1159 = vst.msk [vmem:[%s2768_s4 + $0xb8] sm:$0xff] %vm1135_vm1, %v1094_v36  ;;  %1160 = vst.msk [vmem:[%s2768_s4 + $0xc0] sm:$0xff] %vm1135_vm1, %v1095_v38  ;;  %v1121_v30 = vmax.f32 %v2925_v31, 0.0  ;;  %v1122_v50 = vmax.f32 %v2926_v12, 0.0  ;;  %v2927_v48 = vld [vmem:[#allocation8_spill] sm:$0xff]  ;;  %v2928_v62 = vld [vmem:[#allocation11_spill] sm:$0xff] }
 0x24f   :  { %1161 = vst.msk [vmem:[%s2768_s4 + $0xc8] sm:$0xff] %vm1135_vm1, %v1096_v27  ;;  %1162 = vst.msk [vmem:[%s2768_s4 + $0xd0] sm:$0xff] %vm1135_vm1, %v1097_v46  ;;  %v1123_v57 = vmax.f32 %v2927_v48, 0.0  ;;  %v1124_v10 = vmax.f32 %v2928_v62, 0.0  ;;  %v1126_v11 = vmax.f32 %v2410_v22, 0.0  ;;  %v1127_v17 = vmax.f32 %v2414_v15, 0.0 }
 0x250   :  { %1163 = vst.msk [vmem:[%s2768_s4 + $0xd8] sm:$0xff] %vm1135_vm1, %v1098_v63  ;;  %1164 = vst.msk [vmem:[%s2768_s4 + $0xe0] sm:$0xff] %vm1135_vm1, %v1099_v49  ;;  %v1128_v22 = vmax.f32 %v2418_v43, 0.0  ;;  %v2929_v29 = vld [vmem:[#allocation17_spill] sm:$0xff]  ;;  %v2931_v15 = vld [vmem:[#allocation15_spill] sm:$0xff]  ;;  %v1134_v52 = vmax.f32 %v2442_v3, 0.0 }
 0x251   :  { %1165 = vst.msk [vmem:[%s2768_s4 + $0xe8] sm:$0xff] %vm1135_vm1, %v1100_v41  ;;  %1166 = vst.msk [vmem:[%s2768_s4 + $0xf0] sm:$0xff] %vm1135_vm1, %v1101_v47  ;;  %v1129_v0 = vmax.f32 %v2929_v29, 0.0  ;;  %v2930_v8 = vld [vmem:[#allocation21_spill] sm:$0xff]  ;;  %v1131_v43 = vmax.f32 %v2931_v15, 0.0  ;;  %v2932_v13 = vld [vmem:[#allocation19_spill] sm:$0xff] }
 0x252   :  { %1167 = vst.msk [vmem:[%s2768_s4 + $0xf8] sm:$0xff] %vm1135_vm1, %v1102_v56  ;;  %1168 = vst.msk [vmem:[%s2768_s4 + $0x100] sm:$0xff] %vm1135_vm1, %v1103_v61  ;;  %v1130_v51 = vmax.f32 %v2930_v8, 0.0  ;;  %v1132_v58 = vmax.f32 %v2932_v13, 0.0  ;;  %v2933_v6 = vld [vmem:[#allocation25_spill] sm:$0xff] }
 0x253   :  { %1169 = vst.msk [vmem:[%s2768_s4 + $0x108] sm:$0xff] %vm1135_vm1, %v1104_v53  ;;  %1170 = vst.msk [vmem:[%s2768_s4 + $0x110] sm:$0xff] %vm1135_vm1, %v1105_v59  ;;  %v1133_v20 = vmax.f32 %v2933_v6, 0.0 }
 0x254   :  { %1171 = vst.msk [vmem:[%s2768_s4 + $0x118] sm:$0xff] %vm1135_vm1, %v1106_v4  ;;  %1172 = vst.msk [vmem:[%s2768_s4 + $0x120] sm:$0xff] %vm1135_vm1, %v1107_v9 }
 0x255   :  { %1173 = vst.msk [vmem:[%s2768_s4 + $0x128] sm:$0xff] %vm1135_vm1, %v1108_v1  ;;  %1174 = vst.msk [vmem:[%s2768_s4 + $0x130] sm:$0xff] %vm1135_vm1, %v1109_v7 }
 0x256   :  { %1175 = vst.msk [vmem:[%s2768_s4 + $0x138] sm:$0xff] %vm1135_vm1, %v1110_v16  ;;  %1176 = vst.msk [vmem:[%s2768_s4 + $0x140] sm:$0xff] %vm1135_vm1, %v1111_v21 }
 0x257   :  { %1177 = vst.msk [vmem:[%s2768_s4 + $0x148] sm:$0xff] %vm1135_vm1, %v1112_v40  ;;  %1178 = vst.msk [vmem:[%s2768_s4 + $0x150] sm:$0xff] %vm1135_vm1, %v1113_v26 }
 0x258   :  { %1179 = vst.msk [vmem:[%s2768_s4 + $0x158] sm:$0xff] %vm1135_vm1, %v1114_v32  ;;  %1180 = vst.msk [vmem:[%s2768_s4 + $0x160] sm:$0xff] %vm1135_vm1, %v1115_v18 }
 0x259   :  { %1181 = vst.msk [vmem:[%s2768_s4 + $0x168] sm:$0xff] %vm1135_vm1, %v1116_v2  ;;  %1182 = vst.msk [vmem:[%s2768_s4 + $0x170] sm:$0xff] %vm1135_vm1, %v1117_v23 }
 0x25a   :  { %1183 = vst.msk [vmem:[%s2768_s4 + $0x178] sm:$0xff] %vm1135_vm1, %v1118_v39  ;;  %1184 = vst.msk [vmem:[%s2768_s4 + $0x180] sm:$0xff] %vm1135_vm1, %v1119_v45 }
 0x25b   :  { %1185 = vst.msk [vmem:[%s2768_s4 + $0x188] sm:$0xff] %vm1135_vm1, %v1120_v44  ;;  %1186 = vst.msk [vmem:[%s2768_s4 + $0x190] sm:$0xff] %vm1135_vm1, %v1121_v30 }
 0x25c   :  { %1187 = vst.msk [vmem:[%s2768_s4 + $0x198] sm:$0xff] %vm1135_vm1, %v1122_v50  ;;  %1188 = vst.msk [vmem:[%s2768_s4 + $0x1a0] sm:$0xff] %vm1135_vm1, %v1123_v57 }
 0x25d   :  { %1189 = vst.msk [vmem:[%s2768_s4 + $0x1a8] sm:$0xff] %vm1135_vm1, %v1124_v10  ;;  %1190 = vst.msk [vmem:[%s2768_s4 + $0x1b0] sm:$0xff] %vm1135_vm1, %v1125_v55 }
 0x25e   :  { %1191 = vst.msk [vmem:[%s2768_s4 + $0x1b8] sm:$0xff] %vm1135_vm1, %v1126_v11  ;;  %1192 = vst.msk [vmem:[%s2768_s4 + $0x1c0] sm:$0xff] %vm1135_vm1, %v1127_v17 }
 0x25f   :  { %1193 = vst.msk [vmem:[%s2768_s4 + $0x1c8] sm:$0xff] %vm1135_vm1, %v1128_v22  ;;  %1194 = vst.msk [vmem:[%s2768_s4 + $0x1d0] sm:$0xff] %vm1135_vm1, %v1129_v0 }
 0x260   :  { %1195 = vst.msk [vmem:[%s2768_s4 + $0x1d8] sm:$0xff] %vm1135_vm1, %v1130_v51  ;;  %1196 = vst.msk [vmem:[%s2768_s4 + $0x1e0] sm:$0xff] %vm1135_vm1, %v1131_v43 }
 0x261   :  { %1197 = vst.msk [vmem:[%s2768_s4 + $0x1e8] sm:$0xff] %vm1135_vm1, %v1132_v58  ;;  %1198 = vst.msk [vmem:[%s2768_s4 + $0x1f0] sm:$0xff] %vm1135_vm1, %v1133_v20 }
 0x262   :  { %1199 = vst.msk [vmem:[%s2768_s4 + $0x1f8] sm:$0xff] %vm1135_vm1, %v1134_v52 }

</bundles_post_ra>
